<compile_context>
chip_gen: v7x
topology: tpu7x:2x2x1
jax: 0.10.0
libtpu: 0.0.40
codegen_flags: <defaults>
</compile_context>

<pallas_src>
import math

import jax
import jax.numpy as jnp
from jax import lax
from jax.experimental import pallas as pl
from jax.experimental.pallas import tpu as pltpu

# ---- scaled-down shapes consistent with the module (real BERT: H=768) -------
NUM_BERT_LAYERS = 12
HIDDEN = 32                        # per-layer hidden size (module uses 768)
D = NUM_BERT_LAYERS * HIDDEN       # self-attention input_size (module: 12*768)
D2 = D // 2                        # 192
D4 = D // 4                        # 96
OUT_SIZE = 2
BATCH = 8
SEQ = 8

# lane-padded classifier widths (multiples of 128 -> lane-dense, full MXU N)
D2P = 256
D4P = 128
OUTP = 128


def fused_kernel(cls_ref, wqkv_ref, bqkv_ref,
                 w1_ref, b1_ref, w2_ref, b2_ref, w3_ref, b3_ref,
                 out_ref, att_ref):
    """CLS aggregation + SelfAttentionLayer forward on VMEM-resident blocks."""
    # --- fused CLS aggregation + QKV projection ------------------------------
    # agg[b, l*H + h] = cls[l, b, h];  qkv = agg @ Wqkv + bqkv.
    # Realized as a batched matmul over the layer axis followed by a layer-sum,
    # so no transpose/reshape (sublane<->lane relayout) is needed in-kernel.
    cls = cls_ref[...]                                          # [L, B, H] bf16
    per_layer = lax.dot_general(
        cls, wqkv_ref[...],
        dimension_numbers=(((2,), (1,)), ((0,), (0,))),
        preferred_element_type=jnp.float32)                     # [L, B, 3D] f32
    qkv = jnp.sum(per_layer, axis=0) + bqkv_ref[...]            # [B, 3D]  f32

    q = qkv[:, :D]            # 1/sqrt(D) already folded into Wq / bq
    k = qkv[:, D:2 * D]
    v = qkv[:, 2 * D:]

    # attention over the batch axis ([B, B] scores), exactly as the module does
    scores = lax.dot_general(q, k, (((1,), (1,)), ((), ())),
                             preferred_element_type=jnp.float32)  # [B, B]
    m = jnp.max(scores, axis=-1, keepdims=True)
    p = jnp.exp(scores - m)
    inv_denom = pl.reciprocal(jnp.sum(p, axis=-1, keepdims=True), approx=True)
    attn_w = p * inv_denom

    att = jnp.dot(attn_w, v, preferred_element_type=jnp.float32)  # [B, D] f32
    att_ref[...] = att

    # --- classifier: Dropout -> Linear -> ReLU -> Dropout -> Linear -> ReLU
    #                 -> Dropout -> Linear  (padded to lane-dense widths)
    # TODO(synk): Dropout(p=0.5) treated as identity (eval mode); torch
    #             train-mode RNG is not reproduced.
    h1 = jnp.maximum(
        jnp.dot(att.astype(jnp.bfloat16), w1_ref[...],
                preferred_element_type=jnp.float32) + b1_ref[...], 0.0)
    h2 = jnp.maximum(
        jnp.dot(h1.astype(jnp.bfloat16), w2_ref[...],
                preferred_element_type=jnp.float32) + b2_ref[...], 0.0)
    out_ref[...] = (
        jnp.dot(h2.astype(jnp.bfloat16), w3_ref[...],
                preferred_element_type=jnp.float32) + b3_ref[...])


def _vmem_spec():
    # whole array resident in VMEM; no grid -> no double-buffering machinery
    return pl.BlockSpec(memory_space=pltpu.MemorySpace.VMEM)


def self_attention_layer(cls_states, packed):
    """cls_states: [L, B, H] bf16 CLS tokens (layers 1..12).
    Returns (outputs [B, 2] f32, attended_values [B, D] f32)."""
    (wqkv, bqkv, w1p, b1p, w2p, b2p, w3p, b3p) = packed
    B = cls_states.shape[1]

    args = (cls_states, wqkv, bqkv, w1p, b1p, w2p, b2p, w3p, b3p)
    out_padded, attended = pl.pallas_call(
        fused_kernel,
        out_shape=(jax.ShapeDtypeStruct((B, OUTP), jnp.float32),
                   jax.ShapeDtypeStruct((B, D), jnp.float32)),
        in_specs=[_vmem_spec() for _ in args],
        out_specs=(_vmem_spec(), _vmem_spec()),
    )(*args)
    return out_padded[:, :OUT_SIZE], attended


def bert_layer_aggregation_forward(hidden_states, packed):
    """hidden_states: [13, B, S, H] (index 0 = embedding output, unused as in
    the original: only hidden_states[1:] contribute)."""
    cls = hidden_states[1:, :, 0, :].astype(jnp.bfloat16)   # [12, B, H]
    return self_attention_layer(cls, packed)


def init_self_attention_params(key):
    """Matches init_params: weight ~ N(0, 0.001^2), bias = 0.
    Weights stored [in, out] (transposed relative to torch.nn.Linear)."""
    ks = jax.random.split(key, 6)
    std = 0.001

    def lin(k, fan_in, fan_out):
        w = std * jax.random.normal(k, (fan_in, fan_out), jnp.float32)
        b = jnp.zeros((1, fan_out), jnp.float32)
        return w, b

    wq, bq = lin(ks[0], D, D)
    wk, bk = lin(ks[1], D, D)
    wv, bv = lin(ks[2], D, D)
    w1, b1 = lin(ks[3], D, D2)
    w2, b2 = lin(ks[4], D2, D4)
    w3, b3 = lin(ks[5], D4, OUT_SIZE)
    return (wq, bq, wk, bk, wv, bv, w1, b1, w2, b2, w3, b3)


def pack_params(params):
    """One-time kernel-side parameter transform (done OUTSIDE the jitted fwd):
      * fold 1/sqrt(D) into the query projection (weight and bias),
      * fuse Wq|Wk|Wv into one [L, H, 3D] bf16 weight,
      * zero-pad classifier widths 192/96/2 -> 256/128/128 (zeros propagate
        correctly through ReLU and subsequent matmuls)."""
    (wq, bq, wk, bk, wv, bv, w1, b1, w2, b2, w3, b3) = params
    scale = 1.0 / math.sqrt(float(D))

    wqkv = jnp.concatenate([wq * scale, wk, wv], axis=1)         # [D, 3D]
    wqkv = wqkv.reshape(NUM_BERT_LAYERS, HIDDEN, 3 * D).astype(jnp.bfloat16)
    bqkv = jnp.concatenate([bq * scale, bk, bv], axis=1)         # [1, 3D] f32

    def pad(w, b, rows, cols):
        wp = jnp.zeros((rows, cols), jnp.float32)
        wp = wp.at[:w.shape[0], :w.shape[1]].set(w)
        bp = jnp.zeros((1, cols), jnp.float32)
        bp = bp.at[:, :b.shape[1]].set(b)
        return wp.astype(jnp.bfloat16), bp

    w1p, b1p = pad(w1, b1, D, D2P)
    w2p, b2p = pad(w2, b2, D2P, D4P)
    w3p, b3p = pad(w3, b3, D4P, OUTP)
    return (wqkv, bqkv, w1p, b1p, w2p, b2p, w3p, b3p)


def _reference_forward(hidden_states, params):
    """Plain-JAX f32 reference matching the PyTorch module semantics."""
    (wq, bq, wk, bk, wv, bv, w1, b1, w2, b2, w3, b3) = params
    cls = hidden_states[1:, :, 0, :]
    x = jnp.transpose(cls, (1, 0, 2)).reshape(hidden_states.shape[1], D)
    q = x @ wq + bq
    k = x @ wk + bk
    v = x @ wv + bv
    s = (q @ k.T) / math.sqrt(float(D))
    w = jax.nn.softmax(s, axis=-1)
    att = w @ v
    h1 = jnp.maximum(att @ w1 + b1, 0.0)
    h2 = jnp.maximum(h1 @ w2 + b2, 0.0)
    return h2 @ w3 + b3, att


if __name__ == "__main__":
    key = jax.random.PRNGKey(0)
    k_hs, k_params = jax.random.split(key)

    # Synthetic BERT hidden states: 13 tensors of [B, S, H] stacked on axis 0.
    hidden_states = jax.random.normal(
        k_hs, (NUM_BERT_LAYERS + 1, BATCH, SEQ, HIDDEN), jnp.float32)

    params = init_self_attention_params(k_params)
    packed = pack_params(params)   # one-time parameter transform

    fwd = jax.jit(bert_layer_aggregation_forward)
    outputs, attentions = fwd(hidden_states, packed)
    outputs = jax.block_until_ready(outputs)
    attentions = jax.block_until_ready(attentions)

    assert outputs.shape == (BATCH, OUT_SIZE)
    assert attentions.shape == (BATCH, D)

    # Sanity check vs. plain-JAX f32 reference (tolerance covers bf16 weights).
    ref_out, ref_att = _reference_forward(hidden_states, params)
    assert jnp.allclose(outputs, ref_out, rtol=2e-2, atol=5e-4), (
        float(jnp.max(jnp.abs(outputs - ref_out))))
    assert jnp.allclose(attentions, ref_att, rtol=2e-2, atol=5e-4), (
        float(jnp.max(jnp.abs(attentions - ref_att))))

    print("KERNEL_OK")
</pallas_src>

<mosaic_0001>
module attributes {stable_mosaic.version = 11 : i64} {
  func.func @fused_kernel(%arg0: memref<12x8x32xbf16, #tpu.memory_space<vmem>>, %arg1: memref<12x32x1152xbf16, #tpu.memory_space<vmem>>, %arg2: memref<1x1152xf32, #tpu.memory_space<vmem>>, %arg3: memref<384x256xbf16, #tpu.memory_space<vmem>>, %arg4: memref<1x256xf32, #tpu.memory_space<vmem>>, %arg5: memref<256x128xbf16, #tpu.memory_space<vmem>>, %arg6: memref<1x128xf32, #tpu.memory_space<vmem>>, %arg7: memref<128x128xbf16, #tpu.memory_space<vmem>>, %arg8: memref<1x128xf32, #tpu.memory_space<vmem>>, %arg9: memref<8x128xf32, #tpu.memory_space<vmem>>, %arg10: memref<8x384xf32, #tpu.memory_space<vmem>>) attributes {dimension_semantics = [], scalar_prefetch = 0 : i64, scratch_operands = 0 : i64, tpu.core_type = #tpu.core_type<tc>} {
    %c0 = arith.constant 0 : index
    %c0_0 = arith.constant 0 : index
    %c0_1 = arith.constant 0 : index
    %0 = vector.load %arg0[%c0, %c0_0, %c0_1] : memref<12x8x32xbf16, #tpu.memory_space<vmem>>, vector<12x8x32xbf16>
    %c0_2 = arith.constant 0 : index
    %c0_3 = arith.constant 0 : index
    %c0_4 = arith.constant 0 : index
    %1 = vector.load %arg1[%c0_2, %c0_3, %c0_4] : memref<12x32x1152xbf16, #tpu.memory_space<vmem>>, vector<12x32x1152xbf16>
    %cst = arith.constant dense<0.000000e+00> : vector<12x8x1152xf32>
    %2 = tpu.matmul %0, %1, %cst {dimension_numbers = #tpu.dot_dimension_numbers<[2], [1], [1], [2], [0, 0, 0, 1, 1, 2], [0], [0]>} : vector<12x8x32xbf16>, vector<12x32x1152xbf16>, vector<12x8x1152xf32> -> vector<12x8x1152xf32>
    %cst_5 = arith.constant dense<0.000000e+00> : vector<8x1152xf32>
    %3 = vector.multi_reduction <add>, %2, %cst_5 [0] : vector<12x8x1152xf32> to vector<8x1152xf32>
    %c0_6 = arith.constant 0 : index
    %c0_7 = arith.constant 0 : index
    %4 = vector.load %arg2[%c0_6, %c0_7] : memref<1x1152xf32, #tpu.memory_space<vmem>>, vector<1x1152xf32>
    %5 = vector.broadcast %4 : vector<1x1152xf32> to vector<8x1152xf32>
    %6 = arith.addf %3, %5 : vector<8x1152xf32>
    %7 = vector.extract_strided_slice %6 {offsets = [0, 0], sizes = [8, 384], strides = [1, 1]} : vector<8x1152xf32> to vector<8x384xf32>
    %8 = vector.extract_strided_slice %6 {offsets = [0, 384], sizes = [8, 384], strides = [1, 1]} : vector<8x1152xf32> to vector<8x384xf32>
    %9 = vector.extract_strided_slice %6 {offsets = [0, 768], sizes = [8, 384], strides = [1, 1]} : vector<8x1152xf32> to vector<8x384xf32>
    %cst_8 = arith.constant dense<0.000000e+00> : vector<8x8xf32>
    %10 = tpu.matmul %7, %8, %cst_8 {dimension_numbers = #tpu.dot_dimension_numbers<[1], [1], [0], [0], [0, 0, 1, 0], [], []>} : vector<8x384xf32>, vector<8x384xf32>, vector<8x8xf32> -> vector<8x8xf32>
    %cst_9 = arith.constant dense<0xFF800000> : vector<8xf32>
    %11 = vector.multi_reduction <maximumf>, %10, %cst_9 [1] : vector<8x8xf32> to vector<8xf32>
    %12 = vector.shape_cast %11 : vector<8xf32> to vector<8x1xf32>
    %13 = vector.broadcast %12 : vector<8x1xf32> to vector<8x8xf32>
    %14 = arith.subf %10, %13 : vector<8x8xf32>
    %15 = math.exp %14 : vector<8x8xf32>
    %cst_10 = arith.constant dense<0.000000e+00> : vector<8xf32>
    %16 = vector.multi_reduction <add>, %15, %cst_10 [1] : vector<8x8xf32> to vector<8xf32>
    %17 = vector.shape_cast %16 : vector<8xf32> to vector<8x1xf32>
    %18 = tpu.reciprocal %17 {approx = true} : vector<8x1xf32> -> vector<8x1xf32>
    %19 = vector.broadcast %18 : vector<8x1xf32> to vector<8x8xf32>
    %20 = arith.mulf %15, %19 : vector<8x8xf32>
    %cst_11 = arith.constant dense<0.000000e+00> : vector<8x384xf32>
    %21 = tpu.matmul %20, %9, %cst_11 {dimension_numbers = #tpu.dot_dimension_numbers<[1], [0], [0], [1], [0, 0, 1, 1], [], []>} : vector<8x8xf32>, vector<8x384xf32>, vector<8x384xf32> -> vector<8x384xf32>
    %c0_12 = arith.constant 0 : index
    %c0_13 = arith.constant 0 : index
    %22 = vector.load %arg10[%c0_12, %c0_13] : memref<8x384xf32, #tpu.memory_space<vmem>>, vector<8x384xf32>
    tpu.vector_store %arg10[%c0_12, %c0_13], %21 {strides = array<i32>} : memref<8x384xf32, #tpu.memory_space<vmem>>, vector<8x384xf32>,
    %23 = arith.truncf %21 : vector<8x384xf32> to vector<8x384xbf16>
    %c0_14 = arith.constant 0 : index
    %c0_15 = arith.constant 0 : index
    %24 = vector.load %arg3[%c0_14, %c0_15] : memref<384x256xbf16, #tpu.memory_space<vmem>>, vector<384x256xbf16>
    %cst_16 = arith.constant dense<0.000000e+00> : vector<8x256xf32>
    %25 = tpu.matmul %23, %24, %cst_16 {dimension_numbers = #tpu.dot_dimension_numbers<[1], [0], [0], [1], [0, 0, 1, 1], [], []>} : vector<8x384xbf16>, vector<384x256xbf16>, vector<8x256xf32> -> vector<8x256xf32>
    %c0_17 = arith.constant 0 : index
    %c0_18 = arith.constant 0 : index
    %26 = vector.load %arg4[%c0_17, %c0_18] : memref<1x256xf32, #tpu.memory_space<vmem>>, vector<1x256xf32>
    %27 = vector.broadcast %26 : vector<1x256xf32> to vector<8x256xf32>
    %28 = arith.addf %25, %27 : vector<8x256xf32>
    %cst_19 = arith.constant 0.000000e+00 : f32
    %29 = vector.broadcast %cst_19 : f32 to vector<8x256xf32>
    %30 = arith.maximumf %28, %29 : vector<8x256xf32>
    %31 = arith.truncf %30 : vector<8x256xf32> to vector<8x256xbf16>
    %c0_20 = arith.constant 0 : index
    %c0_21 = arith.constant 0 : index
    %32 = vector.load %arg5[%c0_20, %c0_21] : memref<256x128xbf16, #tpu.memory_space<vmem>>, vector<256x128xbf16>
    %cst_22 = arith.constant dense<0.000000e+00> : vector<8x128xf32>
    %33 = tpu.matmul %31, %32, %cst_22 {dimension_numbers = #tpu.dot_dimension_numbers<[1], [0], [0], [1], [0, 0, 1, 1], [], []>} : vector<8x256xbf16>, vector<256x128xbf16>, vector<8x128xf32> -> vector<8x128xf32>
    %c0_23 = arith.constant 0 : index
    %c0_24 = arith.constant 0 : index
    %34 = vector.load %arg6[%c0_23, %c0_24] : memref<1x128xf32, #tpu.memory_space<vmem>>, vector<1x128xf32>
    %35 = vector.broadcast %34 : vector<1x128xf32> to vector<8x128xf32>
    %36 = arith.addf %33, %35 : vector<8x128xf32>
    %cst_25 = arith.constant 0.000000e+00 : f32
    %37 = vector.broadcast %cst_25 : f32 to vector<8x128xf32>
    %38 = arith.maximumf %36, %37 : vector<8x128xf32>
    %39 = arith.truncf %38 : vector<8x128xf32> to vector<8x128xbf16>
    %c0_26 = arith.constant 0 : index
    %c0_27 = arith.constant 0 : index
    %40 = vector.load %arg7[%c0_26, %c0_27] : memref<128x128xbf16, #tpu.memory_space<vmem>>, vector<128x128xbf16>
    %cst_28 = arith.constant dense<0.000000e+00> : vector<8x128xf32>
    %41 = tpu.matmul %39, %40, %cst_28 {dimension_numbers = #tpu.dot_dimension_numbers<[1], [0], [0], [1], [0, 0, 1, 1], [], []>} : vector<8x128xbf16>, vector<128x128xbf16>, vector<8x128xf32> -> vector<8x128xf32>
    %c0_29 = arith.constant 0 : index
    %c0_30 = arith.constant 0 : index
    %42 = vector.load %arg8[%c0_29, %c0_30] : memref<1x128xf32, #tpu.memory_space<vmem>>, vector<1x128xf32>
    %43 = vector.broadcast %42 : vector<1x128xf32> to vector<8x128xf32>
    %44 = arith.addf %41, %43 : vector<8x128xf32>
    %c0_31 = arith.constant 0 : index
    %c0_32 = arith.constant 0 : index
    %45 = vector.load %arg9[%c0_31, %c0_32] : memref<8x128xf32, #tpu.memory_space<vmem>>, vector<8x128xf32>
    tpu.vector_store %arg9[%c0_31, %c0_32], %44 {strides = array<i32>} : memref<8x128xf32, #tpu.memory_space<vmem>>, vector<8x128xf32>,
    return
  }
}

</mosaic_0001>

<bundles_post_ra>
// kernel: bert_layer_aggregation_forward.1
= control target key start
LH: loop header
LB: loop body
LE: loop exit
PB: predicated region body
PF: predicated region fallthrough
CT: control target
= control target key end

     0   :  { %16 = vsyncpa [#allocation3], 0  ;;  %s6658_s0 = inlined_call_operand.vmem [shape: bf16[12,8,32], index: 0, kind: input, shape index: {}]   ;;  %s6659_s1 = inlined_call_operand.hbm [shape: bf16[12,32,1152], index: 1, kind: input, shape index: {}]   ;;  %s6660_s2 = inlined_call_operand.vmem [shape: f32[1,1152], index: 2, kind: input, shape index: {}]   ;;  %s6661_s3 = inlined_call_operand.hbm [shape: bf16[384,256], index: 3, kind: input, shape index: {}]   ;;  %s6662_s4 = inlined_call_operand.vmem [shape: f32[1,256], index: 4, kind: input, shape index: {}]   ;;  %s6663_s5 = inlined_call_operand.vmem [shape: bf16[256,128], index: 5, kind: input, shape index: {}]   ;;  %s6664_s6 = inlined_call_operand.vmem [shape: f32[1,128], index: 6, kind: input, shape index: {}]   ;;  %s6665_s7 = inlined_call_operand.vmem [shape: bf16[128,128], index: 7, kind: input, shape index: {}]   ;;  %s6666_s8 = inlined_call_operand.vmem [shape: f32[1,128], index: 8, kind: input, shape index: {}]   ;;  %s6667_s9 = inlined_call_operand.vmem [shape: f32[8,128], index: 9, kind: output, shape index: {0}]   ;;  %s6668_s10 = inlined_call_operand.hbm [shape: f32[8,384], index: 10, kind: output, shape index: {1}]  }
   0x1   :  { %17 = vsyncpa [#allocation6], 0 }
   0x2   :  { %18 = vsyncpa [#allocation4], 0  ;;  %s6111_s13 = smov [#allocation2]   ;;  %s6039_s17 = scalar_lea.hbm %s6659_s1, 27648 }
   0x3   :  { %s26_s14 = sshll.u32 %s6111_s13, 4  ;;  %p6040_p0 = scmp.ne.s32.totalorder %s6659_s1, %s6039_s17  ;;  %s27_s14 = int_to_ptr.vmem [resolvable:$true] %s26_s14 }
   0x4   :  { %p6043_p1 = scmp.lt.u32.totalorder %s6039_s17, %s6659_s1 }
   0x6   :  { %p6045_p2 = pnand %p6043_p1, %p6040_p0 }
   0x8   :  { %6048 = shalt.err (!%p6045_p2)
}
   0x9   :  { %s6049_s22 = scalar_lea.vmem %s27_s14, 27648  ;;  %p6054_p4 = scmp.lt.s32.totalorder %s27_s14, %s27_s14 }
   0xa   :  { %p6050_p3 = scmp.ne.s32.totalorder %s27_s14, %s6049_s22  ;;  %p6055_p5 = scmp.lt.s32.totalorder %s6049_s22, %s6049_s22 }
   0xc   :  { %p6056_p6 = por %p6055_p5, %p6054_p4 }
   0xe   :  { %p6057_p7 = pnand %p6056_p6, %p6050_p3 }
  0x10   :  { %6060 = shalt.err (!%p6057_p7)
}
  0x11   :  { %s6112_s23 = smov 576   ;;  %s6113_s24 = smov 36  }
  0x12   :  { %32 = dma.hbm_to_vmem [thread:$0]  %s6659_s1, 27648, %s27_s14, [#allocation3], %s6112_s23, %s6112_s23, %s6113_s24  }
  0x13   :  { %s6114_s27 = smov [#allocation5]   ;;  %s6061_s11 = scalar_lea.hbm %s6661_s3, 6144 }
  0x14   :  { %s40_s28 = sshll.u32 %s6114_s27, 4  ;;  %p6062_p8 = scmp.ne.s32.totalorder %s6661_s3, %s6061_s11  ;;  %s41_s28 = int_to_ptr.vmem [resolvable:$true] %s40_s28 }
  0x15   :  { %p6065_p9 = scmp.lt.u32.totalorder %s6061_s11, %s6661_s3 }
  0x17   :  { %p6067_p10 = pnand %p6065_p9, %p6062_p8 }
  0x19   :  { %6070 = shalt.err (!%p6067_p10)
}
  0x1a   :  { %s6071_s17 = scalar_lea.vmem %s41_s28, 6144  ;;  %p6076_p12 = scmp.lt.s32.totalorder %s41_s28, %s41_s28 }
  0x1b   :  { %p6072_p11 = scmp.ne.s32.totalorder %s41_s28, %s6071_s17  ;;  %p6077_p13 = scmp.lt.s32.totalorder %s6071_s17, %s6071_s17 }
  0x1d   :  { %p6078_p0 = por %p6077_p13, %p6076_p12 }
  0x1f   :  { %p6079_p1 = pnand %p6078_p0, %p6072_p11 }
  0x21   :  { %6082 = shalt.err (!%p6079_p1)
}
  0x22   :  { %s6115_s1 = smov 128   ;;  %s6116_s14 = smov 8  }
  0x23   :  { %46 = dma.hbm_to_vmem [thread:$0]  %s6661_s3, 6144, %s41_s28, [#allocation6], %s6115_s1, %s6115_s1, %s6116_s14  }
  0x24   :  { %6105 = dma.done.wait [#allocation3], 27648  }
  0x25   :  { %6106 = vsyncadd [#allocation3], 4294939648 }
  0x26   :  { %6107 = dma.done.wait [#allocation6], 6144  }
  0x27   :  { %6108 = vsyncadd [#allocation6], 4294961152  ;;  %v6117_v0 = vmov 0.0   ;;  %v6118_v1 = vmov 0   ;;  %vm6119_vm0 = vmmov 0   ;;  %vm408_vm1 = vcmask 261120  }
  0x28   :  { %5483 = vmatprep.subr.bf16.mxu0 %v6117_v0  ;;  %444 = vmatprep.mubr.bf16.mxu1 %v6118_v1  ;;  %v5627_v2 = vld [vmem:[#allocation2 + $0x4] ss:$36 sps:$4 sm:$0xff]   ;;  %v5631_v5 = vld [vmem:[#allocation2 + $0x4c] ss:$36 sps:$4 sm:$0xff]   ;;  %v6208_v8 = vld [vmem:[%s6658_s0] sm:$0xf] }
  0x29   :  { %5487 = vmatprep.mubr.msk.bf16.mxu0 %vm6119_vm0, %v6117_v0  ;;  %v5629_v3 = vld [vmem:[#allocation2] ss:$36 sps:$4 sm:$0xff]   ;;  %412 = vmatprep.subr.bf16.mxu1 %v5627_v2  ;;  %v5633_v6 = vld [vmem:[#allocation2 + $0x48] ss:$36 sps:$4 sm:$0xff]   ;;  %v5638_v12 = vld [vmem:[#allocation2 + $0x98] ss:$36 sps:$4 sm:$0xff]  }
  0x2a   :  { %v5630_v4 = vld [vmem:[#allocation2 + $0x20] ss:$36 sps:$4 sm:$0xff]   ;;  %413 = vmatpush1.bf16.msra.mxu1 %v5629_v3  ;;  %v5634_v7 = vld [vmem:[#allocation2 + $0x68] ss:$36 sps:$4 sm:$0xff]   ;;  %v5643_v13 = vld [vmem:[#allocation2 + $0x54] ss:$36 sps:$4 sm:$0xff]  }
  0x2b   :  { %5484 = vmatpush3.bf16.msra.mxu0 %v5630_v4  ;;  %414 = vmatprep.subr.bf16.mxu1 %v5631_v5  ;;  %v5637_v9 = vld [vmem:[#allocation2 + $0xc] ss:$36 sps:$4 sm:$0xff]   ;;  %v5640_v11 = vld [vmem:[#allocation2 + $0x9c] ss:$36 sps:$4 sm:$0xff]   ;;  %v5646_v14 = vld [vmem:[#allocation2 + $0xe4] ss:$36 sps:$4 sm:$0xff]  }
  0x2c   :  { %5485 = vmatprep.subr.bf16.mxu0 %v6117_v0  ;;  %v5635_v10 = vld [vmem:[#allocation2 + $0x8] ss:$36 sps:$4 sm:$0xff]   ;;  %v5641_v15 = vld [vmem:[#allocation2 + $0x50] ss:$36 sps:$4 sm:$0xff]   ;;  %v5644_v16 = vld [vmem:[#allocation2 + $0xe0] ss:$36 sps:$4 sm:$0xff]  }
  0x2d   :  { %v5649_v17 = vld [vmem:[#allocation2 + $0x14] ss:$36 sps:$4 sm:$0xff]   ;;  %v6219_v19 = vld [vmem:[%s6658_s0 + $0x4] sm:$0xf]  ;;  %v5658_v20 = vld [vmem:[#allocation2 + $0xac] ss:$36 sps:$4 sm:$0xff]  }
  0x2e   :  { %415 = vmatpush1.bf16.msra.mxu1 %v5633_v6  ;;  %v5647_v18 = vld [vmem:[#allocation2 + $0x10] ss:$36 sps:$4 sm:$0xff]   ;;  %v5652_v21 = vld [vmem:[#allocation2 + $0x5c] ss:$36 sps:$4 sm:$0xff]   ;;  %v5656_v22 = vld [vmem:[#allocation2 + $0xa8] ss:$36 sps:$4 sm:$0xff]  }
  0x2f   :  { %5486 = vmatpush3.bf16.msra.mxu0 %v5634_v7  ;;  %453 = vmatprep.subr.bf16.mxu1 %v5637_v9  ;;  %v5664_v23 = vld [vmem:[#allocation2 + $0xf4] ss:$36 sps:$4 sm:$0xff]   ;;  %v5655_v25 = vld [vmem:[#allocation2 + $0x1c] ss:$36 sps:$4 sm:$0xff]   ;;  %v5670_v27 = vld [vmem:[#allocation2 + $0x124] ss:$36 sps:$4 sm:$0xff]  }
  0x30   :  { %752 = vmatprep.subr.bf16.mxu0 %v5640_v11  ;;  %v5650_v24 = vld [vmem:[#allocation2 + $0x58] ss:$36 sps:$4 sm:$0xff]   ;;  %v5662_v26 = vld [vmem:[#allocation2 + $0xf0] ss:$36 sps:$4 sm:$0xff]   ;;  %v5661_v29 = vld [vmem:[#allocation2 + $0x64] ss:$36 sps:$4 sm:$0xff]  }
  0x31   :  { %5077 = vmatmul.mubr.msk.bf16.vlgmr.msra.gmra.mrb[0].mxu1 %vm408_vm1, %v6208_v8  ;;  %v5653_v28 = vld [vmem:[#allocation2 + $0x18] ss:$36 sps:$4 sm:$0xff]   ;;  %v5668_v30 = vld [vmem:[#allocation2 + $0x120] ss:$36 sps:$4 sm:$0xff]   ;;  %v5676_v31 = vld [vmem:[#allocation2 + $0x16c] ss:$36 sps:$4 sm:$0xff]  }
  0x32   :  { %5488 = vmatmul.mubr.msk.bf16.vlgmr.msra.gmra.mrb[0].mxu0 %vm408_vm1, %v6208_v8  ;;  %454 = vmatpush1.bf16.msra.mxu1 %v5635_v10  ;;  %v5659_v32 = vld [vmem:[#allocation2 + $0x60] ss:$36 sps:$4 sm:$0xff]   ;;  %v5667_v33 = vld [vmem:[#allocation2 + $0x94] ss:$36 sps:$4 sm:$0xff]   ;;  %v5674_v35 = vld [vmem:[#allocation2 + $0x168] ss:$36 sps:$4 sm:$0xff]  }
  0x33   :  { %753 = vmatpush1.bf16.msra.mxu0 %v5638_v12  ;;  %455 = vmatprep.subr.bf16.mxu1 %v5643_v13  ;;  %v5665_v34 = vld [vmem:[#allocation2 + $0x90] ss:$36 sps:$4 sm:$0xff]   ;;  %v5673_v37 = vld [vmem:[#allocation2 + $0xdc] ss:$36 sps:$4 sm:$0xff]   ;;  %v6236_v38 = vld [vmem:[%s6658_s0 + $0x8] sm:$0xf] }
  0x34   :  { %754 = vmatprep.subr.bf16.mxu0 %v5646_v14  ;;  %485 = vmatprep.mubr.bf16.mxu1 %v6118_v1  ;;  %v5682_v36 = vld [vmem:[#allocation2 + $0x134] ss:$36 sps:$4 sm:$0xff]   ;;  %v5688_v40 = vld [vmem:[#allocation2 + $0x17c] ss:$36 sps:$4 sm:$0xff]   ;;  %v5679_v42 = vld [vmem:[#allocation2 + $0xa4] ss:$36 sps:$4 sm:$0xff]  }
  0x35   :  { %784 = vmatprep.mubr.bf16.mxu0 %v6118_v1  ;;  %v5680_v39 = vld [vmem:[#allocation2 + $0x130] ss:$36 sps:$4 sm:$0xff]   ;;  %v5671_v41 = vld [vmem:[#allocation2 + $0xd8] ss:$36 sps:$4 sm:$0xff]   ;;  %v5677_v44 = vld [vmem:[#allocation2 + $0xa0] ss:$36 sps:$4 sm:$0xff]  }
  0x36   :  { %456 = vmatpush1.bf16.msra.mxu1 %v5641_v15  ;;  %v5686_v43 = vld [vmem:[#allocation2 + $0x178] ss:$36 sps:$4 sm:$0xff]   ;;  %v5685_v45 = vld [vmem:[#allocation2 + $0xec] ss:$36 sps:$4 sm:$0xff]   ;;  %v5690_v46 = vld [vmem:[#allocation2 + $0x140] ss:$36 sps:$4 sm:$0xff]  }
  0x37   :  { %755 = vmatpush1.bf16.msra.mxu0 %v5644_v16  ;;  %494 = vmatprep.subr.bf16.mxu1 %v5649_v17  ;;  %v5683_v47 = vld [vmem:[#allocation2 + $0xe8] ss:$36 sps:$4 sm:$0xff]   ;;  %v5698_v49 = vld [vmem:[#allocation2 + $0x1bc] ss:$36 sps:$4 sm:$0xff]   ;;  %v5689_v50 = vld [vmem:[#allocation2 + $0xb0] ss:$36 sps:$4 sm:$0xff]  }
  0x38   :  { %834 = vmatprep.subr.bf16.mxu0 %v5658_v20  ;;  %v5692_v48 = vld [vmem:[#allocation2 + $0x188] ss:$36 sps:$4 sm:$0xff]   ;;  %v5696_v51 = vld [vmem:[#allocation2 + $0x1b8] ss:$36 sps:$4 sm:$0xff]   ;;  %v5702_v55 = vld [vmem:[#allocation2 + $0x200] ss:$36 sps:$4 sm:$0xff]  }
  0x39   :  { %5078 = vmatmul.mubr.msk.bf16.vlgmr.msra.gmra.mrb[4].mxu1 %vm408_vm1, %v6208_v8  ;;  %v5704_v52 = vld [vmem:[#allocation2 + $0x204] ss:$36 sps:$4 sm:$0xff]   ;;  %v5691_v53 = vld [vmem:[#allocation2 + $0xf8] ss:$36 sps:$4 sm:$0xff]   ;;  %v5695_v54 = vld [vmem:[#allocation2 + $0x12c] ss:$36 sps:$4 sm:$0xff]  }
  0x3a   :  { %5101 = vmatmul.mubr.msk.bf16.vlgmr.msra.gmra.mrb[4].mxu0 %vm408_vm1, %v6219_v19  ;;  %495 = vmatpush1.bf16.msra.mxu1 %v5647_v18  ;;  %v5710_v56 = vld [vmem:[#allocation2 + $0x1cc] ss:$36 sps:$4 sm:$0xff]   ;;  %v5701_v58 = vld [vmem:[#allocation2 + $0x174] ss:$36 sps:$4 sm:$0xff]   ;;  %v5707_v63 = vld [vmem:[#allocation2 + $0x13c] ss:$36 sps:$4 sm:$0xff]  }
  0x3b   :  { %496 = vmatprep.subr.bf16.mxu1 %v5652_v21  ;;  %526 = vmatprep.mubr.bf16.mxu1 %v6118_v1  ;;  %v5693_v57 = vld [vmem:[#allocation2 + $0x128] ss:$36 sps:$4 sm:$0xff]   ;;  %v5716_v61 = vld [vmem:[#allocation2 + $0x214] ss:$36 sps:$4 sm:$0xff]   ;;  %v5720_v6 = vld [vmem:[#allocation2 + $0x240] ss:$36 sps:$4 sm:$0xff]  }
  0x3c   :  { %835 = vmatpush1.bf16.msra.mxu0 %v5656_v22  ;;  %866 = vmatprep.mubr.bf16.mxu0 %v6118_v1  ;;  %v6265_v59 = vld [vmem:[%s6658_s0 + $0xc] sm:$0xf]  ;;  %v5699_v62 = vld [vmem:[#allocation2 + $0x170] ss:$36 sps:$4 sm:$0xff]   ;;  %v5722_v3 = vld [vmem:[#allocation2 + $0x244] ss:$36 sps:$4 sm:$0xff]  }
  0x3d   :  { %836 = vmatprep.subr.bf16.mxu0 %v5664_v23  ;;  %v5708_v60 = vld [vmem:[#allocation2 + $0x1c8] ss:$36 sps:$4 sm:$0xff]   ;;  %v5714_v2 = vld [vmem:[#allocation2 + $0x210] ss:$36 sps:$4 sm:$0xff]   ;;  %v5705_v4 = vld [vmem:[#allocation2 + $0x138] ss:$36 sps:$4 sm:$0xff]  }
  0x3e   :  { %497 = vmatpush1.bf16.msra.mxu1 %v5650_v24  ;;  %v5713_v5 = vld [vmem:[#allocation2 + $0x184] ss:$36 sps:$4 sm:$0xff]   ;;  %v5728_v7 = vld [vmem:[#allocation2 + $0x28c] ss:$36 sps:$4 sm:$0xff]   ;;  %v5719_v9 = vld [vmem:[#allocation2 + $0x1b4] ss:$36 sps:$4 sm:$0xff]  }
  0x3f   :  { %535 = vmatprep.subr.bf16.mxu1 %v5655_v25  ;;  %v5726_v10 = vld [vmem:[#allocation2 + $0x288] ss:$36 sps:$4 sm:$0xff]   ;;  %v5734_v11 = vld [vmem:[#allocation2 + $0x254] ss:$36 sps:$4 sm:$0xff]   ;;  %v5725_v13 = vld [vmem:[#allocation2 + $0x1fc] ss:$36 sps:$4 sm:$0xff]  }
  0x40   :  { %837 = vmatpush1.bf16.msra.mxu0 %v5662_v26  ;;  %v5717_v12 = vld [vmem:[#allocation2 + $0x1b0] ss:$36 sps:$4 sm:$0xff]   ;;  %v5740_v16 = vld [vmem:[#allocation2 + $0x29c] ss:$36 sps:$4 sm:$0xff]   ;;  %v5731_v18 = vld [vmem:[#allocation2 + $0x1c4] ss:$36 sps:$4 sm:$0xff]  }
  0x41   :  { %5079 = vmatmul.mubr.msk.bf16.vlgmr.msra.gmra.mrb[8].mxu1 %vm408_vm1, %v6208_v8  ;;  %1010 = vmatprep.subr.bf16.mxu0 %v5670_v27  ;;  %v6282_v14 = vld [vmem:[%s6658_s0 + $0x10] sm:$0xf]  ;;  %v5723_v17 = vld [vmem:[#allocation2 + $0x1f8] ss:$36 sps:$4 sm:$0xff]   ;;  %v5729_v20 = vld [vmem:[#allocation2 + $0x1c0] ss:$36 sps:$4 sm:$0xff]  }
  0x42   :  { %536 = vmatpush1.bf16.msra.mxu1 %v5653_v28  ;;  %567 = vmatprep.mubr.bf16.mxu1 %v6118_v1  ;;  %v5732_v15 = vld [vmem:[#allocation2 + $0x250] ss:$36 sps:$4 sm:$0xff]   ;;  %v5742_v22 = vld [vmem:[#allocation2 + $0x260] ss:$36 sps:$4 sm:$0xff]   ;;  %v5735_v23 = vld [vmem:[#allocation2 + $0x208] ss:$36 sps:$4 sm:$0xff]  }
  0x43   :  { %537 = vmatprep.subr.bf16.mxu1 %v5661_v29  ;;  %5103 = vmatmul.mubr.msk.bf16.vlgmr.msra.gmra.mrb[8].mxu0 %vm408_vm1, %v6219_v19  ;;  %v5737_v21 = vld [vmem:[#allocation2 + $0x20c] ss:$36 sps:$4 sm:$0xff]   ;;  %v5750_v25 = vld [vmem:[#allocation2 + $0x2dc] ss:$36 sps:$4 sm:$0xff]   ;;  %v5756_v28 = vld [vmem:[#allocation2 + $0x324] ss:$36 sps:$4 sm:$0xff]  }
  0x44   :  { %1011 = vmatpush1.bf16.msra.mxu0 %v5668_v30  ;;  %1042 = vmatprep.mubr.bf16.mxu0 %v6118_v1  ;;  %v5744_v24 = vld [vmem:[#allocation2 + $0x2a8] ss:$36 sps:$4 sm:$0xff]   ;;  %v5741_v26 = vld [vmem:[#allocation2 + $0x1d0] ss:$36 sps:$4 sm:$0xff]   ;;  %v5748_v27 = vld [vmem:[#allocation2 + $0x2d8] ss:$36 sps:$4 sm:$0xff]  }
  0x45   :  { %1012 = vmatprep.subr.bf16.mxu0 %v5676_v31  ;;  %v5743_v29 = vld [vmem:[#allocation2 + $0x218] ss:$36 sps:$4 sm:$0xff]   ;;  %v5747_v30 = vld [vmem:[#allocation2 + $0x24c] ss:$36 sps:$4 sm:$0xff]   ;;  %v5754_v31 = vld [vmem:[#allocation2 + $0x320] ss:$36 sps:$4 sm:$0xff]  }
  0x46   :  { %538 = vmatpush1.bf16.msra.mxu1 %v5659_v32  ;;  %v5762_v32 = vld [vmem:[#allocation2 + $0x2ec] ss:$36 sps:$4 sm:$0xff]   ;;  %vm4202_vm2 = vcmask 64512   ;;  %s6120_s25 = smov [#allocation7]  }
  0x47   :  { %711 = vmatprep.subr.bf16.mxu1 %v5667_v33  ;;  %v5745_v33 = vld [vmem:[#allocation2 + $0x248] ss:$36 sps:$4 sm:$0xff]   ;;  %s5047_s26 = sshll.u32 %s6120_s25, 4  ;;  %s5048_s26 = int_to_ptr.vmem [resolvable:$true] %s5047_s26 }
  0x48   :  { %1013 = vmatpush1.bf16.msra.mxu0 %v5674_v35  ;;  %v6311_v35 = vld [vmem:[%s6658_s0 + $0x14] sm:$0xf]  ;;  %s6083_s27 = scalar_lea.vmem %s5048_s26, 384  ;;  %p6088_p3 = scmp.lt.s32.totalorder %s5048_s26, %s5048_s26 }
  0x49   :  { %5080 = vmatmul.mubr.msk.bf16.vlgmr.msra.gmra.mrb[12].mxu1 %vm408_vm1, %v6208_v8  ;;  %1092 = vmatprep.subr.bf16.mxu0 %v5682_v36  ;;  %v5711_v8 = vld [vmem:[#allocation2 + $0x180] ss:$36 sps:$4 sm:$0xff]   ;;  %v5760_v36 = vld [vmem:[#allocation2 + $0x2e8] ss:$36 sps:$4 sm:$0xff]   ;;  %p6084_p2 = scmp.ne.s32.totalorder %s5048_s26, %s6083_s27  ;;  %p6089_p4 = scmp.lt.s32.totalorder %s6083_s27, %s6083_s27 }
  0x4a   :  { %712 = vmatpush1.bf16.msra.mxu1 %v5665_v34  ;;  %743 = vmatprep.mubr.bf16.mxu1 %v6118_v1  ;;  %v5753_v34 = vld [vmem:[#allocation2 + $0x294] ss:$36 sps:$4 sm:$0xff]  }
  0x4b   :  { %713 = vmatprep.subr.bf16.mxu1 %v5673_v37  ;;  %5123 = vmatmul.mubr.msk.bf16.vlgmr.msra.gmra.mrb[12].mxu0 %vm408_vm1, %v6236_v38  ;;  %v5768_v37 = vld [vmem:[#allocation2 + $0x334] ss:$36 sps:$4 sm:$0xff]   ;;  %p6090_p5 = por %p6089_p4, %p6088_p3 }
  0x4c   :  { %1093 = vmatpush1.bf16.msra.mxu0 %v5680_v39  ;;  %1124 = vmatprep.mubr.bf16.mxu0 %v6118_v1  ;;  %v5759_v39 = vld [vmem:[#allocation2 + $0x25c] ss:$36 sps:$4 sm:$0xff]  }
  0x4d   :  { %1094 = vmatprep.subr.bf16.mxu0 %v5688_v40  ;;  %v5766_v40 = vld [vmem:[#allocation2 + $0x330] ss:$36 sps:$4 sm:$0xff]   ;;  %p6091_p6 = pnand %p6090_p5, %p6084_p2 }
  0x4e   :  { %714 = vmatpush1.bf16.msra.mxu1 %v5671_v41  ;;  %v5774_v41 = vld [vmem:[#allocation2 + $0x364] ss:$36 sps:$4 sm:$0xff]  }
  0x4f   :  { %793 = vmatprep.subr.bf16.mxu1 %v5679_v42  ;;  %v5757_v42 = vld [vmem:[#allocation2 + $0x258] ss:$36 sps:$4 sm:$0xff]  }
  0x50   :  { %1095 = vmatpush1.bf16.msra.mxu0 %v5686_v43  ;;  %v5765_v43 = vld [vmem:[#allocation2 + $0x2a4] ss:$36 sps:$4 sm:$0xff]  }
  0x51   :  { %5100 = vmatmul.mubr.msk.bf16.vlgmr.msra.gmra.mrb[16].mxu1 %vm408_vm1, %v6219_v19  ;;  %5499 = vmatprep.subr.bf16.mxu0 %v6117_v0 }
  0x52   :  { %794 = vmatpush1.bf16.msra.mxu1 %v5677_v44  ;;  %825 = vmatprep.mubr.bf16.mxu1 %v6118_v1  ;;  %v5772_v44 = vld [vmem:[#allocation2 + $0x360] ss:$36 sps:$4 sm:$0xff]  }
  0x53   :  { %795 = vmatprep.subr.bf16.mxu1 %v5685_v45  ;;  %5125 = vmatmul.mubr.msk.bf16.vlgmr.msra.gmra.mrb[16].mxu0 %vm408_vm1, %v6236_v38  ;;  %v5780_v45 = vld [vmem:[#allocation2 + $0x3ac] ss:$36 sps:$4 sm:$0xff]  }
  0x54   :  { %5500 = vmatpush3.bf16.msra.mxu0 %v5690_v46  ;;  %5503 = vmatprep.mubr.msk.bf16.mxu0 %vm6119_vm0, %v6117_v0  ;;  %v5763_v46 = vld [vmem:[#allocation2 + $0x2a0] ss:$36 sps:$4 sm:$0xff]  }
  0x55   :  { %5501 = vmatprep.subr.bf16.mxu0 %v6117_v0 }
  0x56   :  { %796 = vmatpush1.bf16.msra.mxu1 %v5683_v47  ;;  %v5771_v47 = vld [vmem:[#allocation2 + $0x2d4] ss:$36 sps:$4 sm:$0xff]  }
  0x57   :  { %5491 = vmatprep.subr.bf16.mxu1 %v6117_v0 }
  0x58   :  { %5502 = vmatpush3.bf16.msra.mxu0 %v5692_v48  ;;  %v5778_v48 = vld [vmem:[#allocation2 + $0x3a8] ss:$36 sps:$4 sm:$0xff]  }
  0x59   :  { %5102 = vmatmul.mubr.msk.bf16.vlgmr.msra.gmra.mrb[20].mxu1 %vm408_vm1, %v6219_v19  ;;  %1350 = vmatprep.subr.bf16.mxu0 %v5698_v49  ;;  %v5786_v49 = vld [vmem:[#allocation2 + $0x374] ss:$36 sps:$4 sm:$0xff]  }
  0x5a   :  { %5492 = vmatpush3.bf16.msra.mxu1 %v5689_v50  ;;  %5495 = vmatprep.mubr.msk.bf16.mxu1 %vm6119_vm0, %v6117_v0  ;;  %v5769_v50 = vld [vmem:[#allocation2 + $0x2d0] ss:$36 sps:$4 sm:$0xff]  }
  0x5b   :  { %5493 = vmatprep.subr.bf16.mxu1 %v6117_v0  ;;  %5504 = vmatmul.mubr.msk.bf16.vlgmr.msra.gmra.mrb[20].mxu0 %vm408_vm1, %v6236_v38 }
  0x5c   :  { %1351 = vmatpush1.bf16.msra.mxu0 %v5696_v51  ;;  %1382 = vmatprep.mubr.bf16.mxu0 %v6118_v1  ;;  %v5777_v51 = vld [vmem:[#allocation2 + $0x31c] ss:$36 sps:$4 sm:$0xff]  }
  0x5d   :  { %1352 = vmatprep.subr.bf16.mxu0 %v5704_v52  ;;  %v6328_v52 = vld [vmem:[%s6658_s0 + $0x18] sm:$0xf] }
  0x5e   :  { %5494 = vmatpush3.bf16.msra.mxu1 %v5691_v53  ;;  %v5784_v53 = vld [vmem:[#allocation2 + $0x370] ss:$36 sps:$4 sm:$0xff]  }
  0x5f   :  { %1051 = vmatprep.subr.bf16.mxu1 %v5695_v54  ;;  %v5792_v54 = vld [vmem:[#allocation2 + $0x3bc] ss:$36 sps:$4 sm:$0xff]  }
  0x60   :  { %1353 = vmatpush1.bf16.msra.mxu0 %v5702_v55  ;;  %v5775_v55 = vld [vmem:[#allocation2 + $0x318] ss:$36 sps:$4 sm:$0xff]  }
  0x61   :  { %5496 = vmatmul.mubr.msk.bf16.vlgmr.msra.gmra.mrb[24].mxu1 %vm408_vm1, %v6219_v19  ;;  %1432 = vmatprep.subr.bf16.mxu0 %v5710_v56  ;;  %v5738_v19 = vld [vmem:[#allocation2 + $0x298] ss:$36 sps:$4 sm:$0xff]   ;;  %v5783_v56 = vld [vmem:[#allocation2 + $0x2e4] ss:$36 sps:$4 sm:$0xff]  }
  0x62   :  { %1052 = vmatpush1.bf16.msra.mxu1 %v5693_v57  ;;  %1083 = vmatprep.mubr.bf16.mxu1 %v6118_v1  ;;  %v5790_v57 = vld [vmem:[#allocation2 + $0x3b8] ss:$36 sps:$4 sm:$0xff]  }
  0x63   :  { %1053 = vmatprep.subr.bf16.mxu1 %v5701_v58  ;;  %5147 = vmatmul.mubr.msk.bf16.vlgmr.msra.gmra.mrb[24].mxu0 %vm408_vm1, %v6265_v59  ;;  %v5781_v58 = vld [vmem:[#allocation2 + $0x2e0] ss:$36 sps:$4 sm:$0xff]  }
  0x64   :  { %1433 = vmatpush1.bf16.msra.mxu0 %v5708_v60  ;;  %1464 = vmatprep.mubr.bf16.mxu0 %v6118_v1  ;;  %v5794_v60 = vld [vmem:[#allocation2 + $0x380] ss:$36 sps:$4 sm:$0xff]  }
  0x65   :  { %1434 = vmatprep.subr.bf16.mxu0 %v5716_v61  ;;  %v5787_v61 = vld [vmem:[#allocation2 + $0x328] ss:$36 sps:$4 sm:$0xff]  }
  0x66   :  { %1054 = vmatpush1.bf16.msra.mxu1 %v5699_v62  ;;  %v5796_v62 = vld [vmem:[#allocation2 + $0x3c8] ss:$36 sps:$4 sm:$0xff]  }
  0x67   :  { %1133 = vmatprep.subr.bf16.mxu1 %v5707_v63  ;;  %v5802_v63 = vld [vmem:[#allocation2 + $0x3fc] ss:$36 sps:$4 sm:$0xff]  }
  0x68   :  { %1435 = vmatpush1.bf16.msra.mxu0 %v5714_v2  ;;  %v5793_v2 = vld [vmem:[#allocation2 + $0x2f0] ss:$36 sps:$4 sm:$0xff]  }
  0x69   :  { %5124 = vmatmul.mubr.msk.bf16.vlgmr.msra.gmra.mrb[28].mxu1 %vm408_vm1, %v6236_v38  ;;  %1608 = vmatprep.subr.bf16.mxu0 %v5722_v3  ;;  %v5800_v3 = vld [vmem:[#allocation2 + $0x3f8] ss:$36 sps:$4 sm:$0xff]  }
  0x6a   :  { %1134 = vmatpush1.bf16.msra.mxu1 %v5705_v4  ;;  %1165 = vmatprep.mubr.bf16.mxu1 %v6118_v1  ;;  %v5808_v4 = vld [vmem:[#allocation2 + $0x444] ss:$36 sps:$4 sm:$0xff]  }
  0x6b   :  { %1135 = vmatprep.subr.bf16.mxu1 %v5713_v5  ;;  %5149 = vmatmul.mubr.msk.bf16.vlgmr.msra.gmra.mrb[28].mxu0 %vm408_vm1, %v6265_v59  ;;  %v5795_v5 = vld [vmem:[#allocation2 + $0x338] ss:$36 sps:$4 sm:$0xff]  }
  0x6c   :  { %1609 = vmatpush1.bf16.msra.mxu0 %v5720_v6  ;;  %1640 = vmatprep.mubr.bf16.mxu0 %v6118_v1  ;;  %v5799_v6 = vld [vmem:[#allocation2 + $0x36c] ss:$36 sps:$4 sm:$0xff]  }
  0x6d   :  { %1610 = vmatprep.subr.bf16.mxu0 %v5728_v7  ;;  %v5797_v7 = vld [vmem:[#allocation2 + $0x368] ss:$36 sps:$4 sm:$0xff]  }
  0x6e   :  { %1136 = vmatpush1.bf16.msra.mxu1 %v5711_v8  ;;  %v5806_v8 = vld [vmem:[#allocation2 + $0x440] ss:$36 sps:$4 sm:$0xff]  }
  0x6f   :  { %1309 = vmatprep.subr.bf16.mxu1 %v5719_v9  ;;  %v5814_v9 = vld [vmem:[#allocation2 + $0x40c] ss:$36 sps:$4 sm:$0xff]  }
  0x70   :  { %1611 = vmatpush1.bf16.msra.mxu0 %v5726_v10  ;;  %v5805_v10 = vld [vmem:[#allocation2 + $0x3b4] ss:$36 sps:$4 sm:$0xff]  }
  0x71   :  { %5126 = vmatmul.mubr.msk.bf16.vlgmr.msra.gmra.mrb[32].mxu1 %vm408_vm1, %v6236_v38  ;;  %1690 = vmatprep.subr.bf16.mxu0 %v5734_v11  ;;  %v5751_v38 = vld [vmem:[#allocation2 + $0x290] ss:$36 sps:$4 sm:$0xff]   ;;  %v6357_v11 = vld [vmem:[%s6658_s0 + $0x1c] sm:$0xf] }
  0x72   :  { %1310 = vmatpush1.bf16.msra.mxu1 %v5717_v12  ;;  %1341 = vmatprep.mubr.bf16.mxu1 %v6118_v1  ;;  %v5812_v12 = vld [vmem:[#allocation2 + $0x408] ss:$36 sps:$4 sm:$0xff]  }
  0x73   :  { %1311 = vmatprep.subr.bf16.mxu1 %v5725_v13  ;;  %5169 = vmatmul.mubr.msk.bf16.vlgmr.msra.gmra.mrb[32].mxu0 %vm408_vm1, %v6282_v14  ;;  %v5820_v13 = vld [vmem:[#allocation2 + $0x454] ss:$36 sps:$4 sm:$0xff]  }
  0x74   :  { %1691 = vmatpush1.bf16.msra.mxu0 %v5732_v15  ;;  %1722 = vmatprep.mubr.bf16.mxu0 %v6118_v1  ;;  %v5811_v15 = vld [vmem:[#allocation2 + $0x37c] ss:$36 sps:$4 sm:$0xff]  }
  0x75   :  { %1692 = vmatprep.subr.bf16.mxu0 %v5740_v16  ;;  %v5818_v16 = vld [vmem:[#allocation2 + $0x450] ss:$36 sps:$4 sm:$0xff]  }
  0x76   :  { %1312 = vmatpush1.bf16.msra.mxu1 %v5723_v17  ;;  %v5826_v17 = vld [vmem:[#allocation2 + $0x484] ss:$36 sps:$4 sm:$0xff]  }
  0x77   :  { %1391 = vmatprep.subr.bf16.mxu1 %v5731_v18  ;;  %v5809_v18 = vld [vmem:[#allocation2 + $0x378] ss:$36 sps:$4 sm:$0xff]  }
  0x78   :  { %1693 = vmatpush1.bf16.msra.mxu0 %v5738_v19  ;;  %v5817_v19 = vld [vmem:[#allocation2 + $0x3c4] ss:$36 sps:$4 sm:$0xff]  }
  0x79   :  { %5146 = vmatmul.mubr.msk.bf16.vlgmr.msra.gmra.mrb[36].mxu1 %vm408_vm1, %v6265_v59  ;;  %5515 = vmatprep.subr.bf16.mxu0 %v6117_v0 }
  0x7a   :  { %1392 = vmatpush1.bf16.msra.mxu1 %v5729_v20  ;;  %1423 = vmatprep.mubr.bf16.mxu1 %v6118_v1  ;;  %v5824_v20 = vld [vmem:[#allocation2 + $0x480] ss:$36 sps:$4 sm:$0xff]  }
  0x7b   :  { %1393 = vmatprep.subr.bf16.mxu1 %v5737_v21  ;;  %5171 = vmatmul.mubr.msk.bf16.vlgmr.msra.gmra.mrb[36].mxu0 %vm408_vm1, %v6282_v14  ;;  %v5832_v21 = vld [vmem:[#allocation2 + $0x4cc] ss:$36 sps:$4 sm:$0xff]  }
  0x7c   :  { %5516 = vmatpush3.bf16.msra.mxu0 %v5742_v22  ;;  %5519 = vmatprep.mubr.msk.bf16.mxu0 %vm6119_vm0, %v6117_v0  ;;  %v5815_v22 = vld [vmem:[#allocation2 + $0x3c0] ss:$36 sps:$4 sm:$0xff]  }
  0x7d   :  { %5517 = vmatprep.subr.bf16.mxu0 %v6117_v0 }
  0x7e   :  { %1394 = vmatpush1.bf16.msra.mxu1 %v5735_v23  ;;  %v5823_v23 = vld [vmem:[#allocation2 + $0x3f4] ss:$36 sps:$4 sm:$0xff]  }
  0x7f   :  { %5507 = vmatprep.subr.bf16.mxu1 %v6117_v0 }
  0x80   :  { %5518 = vmatpush3.bf16.msra.mxu0 %v5744_v24  ;;  %v5830_v24 = vld [vmem:[#allocation2 + $0x4c8] ss:$36 sps:$4 sm:$0xff]  }
  0x81   :  { %5148 = vmatmul.mubr.msk.bf16.vlgmr.msra.gmra.mrb[40].mxu1 %vm408_vm1, %v6265_v59  ;;  %1948 = vmatprep.subr.bf16.mxu0 %v5750_v25  ;;  %v5838_v25 = vld [vmem:[#allocation2 + $0x494] ss:$36 sps:$4 sm:$0xff]  }
  0x82   :  { %5508 = vmatpush3.bf16.msra.mxu1 %v5741_v26  ;;  %5511 = vmatprep.mubr.msk.bf16.mxu1 %vm6119_vm0, %v6117_v0  ;;  %v5821_v26 = vld [vmem:[#allocation2 + $0x3f0] ss:$36 sps:$4 sm:$0xff]  }
  0x83   :  { %5509 = vmatprep.subr.bf16.mxu1 %v6117_v0  ;;  %5520 = vmatmul.mubr.msk.bf16.vlgmr.msra.gmra.mrb[40].mxu0 %vm408_vm1, %v6282_v14 }
  0x84   :  { %1949 = vmatpush1.bf16.msra.mxu0 %v5748_v27  ;;  %1980 = vmatprep.mubr.bf16.mxu0 %v6118_v1  ;;  %v5829_v27 = vld [vmem:[#allocation2 + $0x43c] ss:$36 sps:$4 sm:$0xff]  }
  0x85   :  { %1950 = vmatprep.subr.bf16.mxu0 %v5756_v28  ;;  %v5827_v28 = vld [vmem:[#allocation2 + $0x438] ss:$36 sps:$4 sm:$0xff]  }
  0x86   :  { %5510 = vmatpush3.bf16.msra.mxu1 %v5743_v29  ;;  %v6374_v29 = vld [vmem:[%s6658_s0 + $0x20] sm:$0xf] }
  0x87   :  { %1649 = vmatprep.subr.bf16.mxu1 %v5747_v30  ;;  %v5836_v30 = vld [vmem:[#allocation2 + $0x490] ss:$36 sps:$4 sm:$0xff]  }
  0x88   :  { %1951 = vmatpush1.bf16.msra.mxu0 %v5754_v31  ;;  %v5835_v31 = vld [vmem:[#allocation2 + $0x404] ss:$36 sps:$4 sm:$0xff]  }
  0x89   :  { %5512 = vmatmul.mubr.msk.bf16.vlgmr.msra.gmra.mrb[44].mxu1 %vm408_vm1, %v6265_v59  ;;  %2030 = vmatprep.subr.bf16.mxu0 %v5762_v32  ;;  %v5789_v59 = vld [vmem:[#allocation2 + $0x32c] ss:$36 sps:$4 sm:$0xff]   ;;  %v5844_v32 = vld [vmem:[#allocation2 + $0x4dc] ss:$36 sps:$4 sm:$0xff]  }
  0x8a   :  { %1650 = vmatpush1.bf16.msra.mxu1 %v5745_v33  ;;  %1681 = vmatprep.mubr.bf16.mxu1 %v6118_v1  ;;  %v5842_v33 = vld [vmem:[#allocation2 + $0x4d8] ss:$36 sps:$4 sm:$0xff]  }
  0x8b   :  { %1651 = vmatprep.subr.bf16.mxu1 %v5753_v34  ;;  %5193 = vmatmul.mubr.msk.bf16.vlgmr.msra.gmra.mrb[44].mxu0 %vm408_vm1, %v6311_v35  ;;  %v5833_v34 = vld [vmem:[#allocation2 + $0x400] ss:$36 sps:$4 sm:$0xff]  }
  0x8c   :  { %2031 = vmatpush1.bf16.msra.mxu0 %v5760_v36  ;;  %2062 = vmatprep.mubr.bf16.mxu0 %v6118_v1  ;;  %v5846_v36 = vld [vmem:[#allocation2 + $0x4a0] ss:$36 sps:$4 sm:$0xff]  }
  0x8d   :  { %2032 = vmatprep.subr.bf16.mxu0 %v5768_v37  ;;  %v5839_v37 = vld [vmem:[#allocation2 + $0x448] ss:$36 sps:$4 sm:$0xff]  }
  0x8e   :  { %1652 = vmatpush1.bf16.msra.mxu1 %v5751_v38  ;;  %v5848_v38 = vld [vmem:[#allocation2 + $0x4e8] ss:$36 sps:$4 sm:$0xff]  }
  0x8f   :  { %1731 = vmatprep.subr.bf16.mxu1 %v5759_v39  ;;  %v5854_v39 = vld [vmem:[#allocation2 + $0x51c] ss:$36 sps:$4 sm:$0xff]  }
  0x90   :  { %2033 = vmatpush1.bf16.msra.mxu0 %v5766_v40  ;;  %v5845_v40 = vld [vmem:[#allocation2 + $0x410] ss:$36 sps:$4 sm:$0xff]  }
  0x91   :  { %5170 = vmatmul.mubr.msk.bf16.vlgmr.msra.gmra.mrb[48].mxu1 %vm408_vm1, %v6282_v14  ;;  %2206 = vmatprep.subr.bf16.mxu0 %v5774_v41  ;;  %v5852_v41 = vld [vmem:[#allocation2 + $0x518] ss:$36 sps:$4 sm:$0xff]  }
  0x92   :  { %1732 = vmatpush1.bf16.msra.mxu1 %v5757_v42  ;;  %1763 = vmatprep.mubr.bf16.mxu1 %v6118_v1  ;;  %v5860_v42 = vld [vmem:[#allocation2 + $0x564] ss:$36 sps:$4 sm:$0xff]  }
  0x93   :  { %1733 = vmatprep.subr.bf16.mxu1 %v5765_v43  ;;  %5195 = vmatmul.mubr.msk.bf16.vlgmr.msra.gmra.mrb[48].mxu0 %vm408_vm1, %v6311_v35  ;;  %v5847_v43 = vld [vmem:[#allocation2 + $0x458] ss:$36 sps:$4 sm:$0xff]  }
  0x94   :  { %2207 = vmatpush1.bf16.msra.mxu0 %v5772_v44  ;;  %2238 = vmatprep.mubr.bf16.mxu0 %v6118_v1  ;;  %v5851_v44 = vld [vmem:[#allocation2 + $0x48c] ss:$36 sps:$4 sm:$0xff]  }
  0x95   :  { %2208 = vmatprep.subr.bf16.mxu0 %v5780_v45  ;;  %v5858_v45 = vld [vmem:[#allocation2 + $0x560] ss:$36 sps:$4 sm:$0xff]  }
  0x96   :  { %1734 = vmatpush1.bf16.msra.mxu1 %v5763_v46  ;;  %v5866_v46 = vld [vmem:[#allocation2 + $0x52c] ss:$36 sps:$4 sm:$0xff]  }
  0x97   :  { %1907 = vmatprep.subr.bf16.mxu1 %v5771_v47  ;;  %v5849_v47 = vld [vmem:[#allocation2 + $0x488] ss:$36 sps:$4 sm:$0xff]  }
  0x98   :  { %2209 = vmatpush1.bf16.msra.mxu0 %v5778_v48  ;;  %v5857_v48 = vld [vmem:[#allocation2 + $0x4d4] ss:$36 sps:$4 sm:$0xff]  }
  0x99   :  { %5172 = vmatmul.mubr.msk.bf16.vlgmr.msra.gmra.mrb[52].mxu1 %vm408_vm1, %v6282_v14  ;;  %2288 = vmatprep.subr.bf16.mxu0 %v5786_v49  ;;  %v5803_v14 = vld [vmem:[#allocation2 + $0x3b0] ss:$36 sps:$4 sm:$0xff]   ;;  %v6403_v49 = vld [vmem:[%s6658_s0 + $0x24] sm:$0xf] }
  0x9a   :  { %1908 = vmatpush1.bf16.msra.mxu1 %v5769_v50  ;;  %1939 = vmatprep.mubr.bf16.mxu1 %v6118_v1  ;;  %v5864_v50 = vld [vmem:[#allocation2 + $0x528] ss:$36 sps:$4 sm:$0xff]  }
  0x9b   :  { %1909 = vmatprep.subr.bf16.mxu1 %v5777_v51  ;;  %5215 = vmatmul.mubr.msk.bf16.vlgmr.msra.gmra.mrb[52].mxu0 %vm408_vm1, %v6328_v52  ;;  %v5872_v51 = vld [vmem:[#allocation2 + $0x574] ss:$36 sps:$4 sm:$0xff]  }
  0x9c   :  { %2289 = vmatpush1.bf16.msra.mxu0 %v5784_v53  ;;  %2320 = vmatprep.mubr.bf16.mxu0 %v6118_v1  ;;  %v5863_v53 = vld [vmem:[#allocation2 + $0x49c] ss:$36 sps:$4 sm:$0xff]  }
  0x9d   :  { %2290 = vmatprep.subr.bf16.mxu0 %v5792_v54  ;;  %v5870_v54 = vld [vmem:[#allocation2 + $0x570] ss:$36 sps:$4 sm:$0xff]  }
  0x9e   :  { %1910 = vmatpush1.bf16.msra.mxu1 %v5775_v55  ;;  %v5878_v55 = vld [vmem:[#allocation2 + $0x5a4] ss:$36 sps:$4 sm:$0xff]  }
  0x9f   :  { %1989 = vmatprep.subr.bf16.mxu1 %v5783_v56  ;;  %v5861_v56 = vld [vmem:[#allocation2 + $0x498] ss:$36 sps:$4 sm:$0xff]  }
  0xa0   :  { %2291 = vmatpush1.bf16.msra.mxu0 %v5790_v57  ;;  %v5869_v57 = vld [vmem:[#allocation2 + $0x4e4] ss:$36 sps:$4 sm:$0xff]  }
  0xa1   :  { %5192 = vmatmul.mubr.msk.bf16.vlgmr.msra.gmra.mrb[56].mxu1 %vm408_vm1, %v6311_v35  ;;  %5531 = vmatprep.subr.bf16.mxu0 %v6117_v0 }
  0xa2   :  { %1990 = vmatpush1.bf16.msra.mxu1 %v5781_v58  ;;  %2021 = vmatprep.mubr.bf16.mxu1 %v6118_v1  ;;  %v5876_v58 = vld [vmem:[#allocation2 + $0x5a0] ss:$36 sps:$4 sm:$0xff]  }
  0xa3   :  { %1991 = vmatprep.subr.bf16.mxu1 %v5789_v59  ;;  %5217 = vmatmul.mubr.msk.bf16.vlgmr.msra.gmra.mrb[56].mxu0 %vm408_vm1, %v6328_v52  ;;  %v5884_v59 = vld [vmem:[#allocation2 + $0x5ec] ss:$36 sps:$4 sm:$0xff]  }
  0xa4   :  { %5532 = vmatpush3.bf16.msra.mxu0 %v5794_v60  ;;  %5535 = vmatprep.mubr.msk.bf16.mxu0 %vm6119_vm0, %v6117_v0  ;;  %v5867_v60 = vld [vmem:[#allocation2 + $0x4e0] ss:$36 sps:$4 sm:$0xff]  }
  0xa5   :  { %5533 = vmatprep.subr.bf16.mxu0 %v6117_v0 }
  0xa6   :  { %1992 = vmatpush1.bf16.msra.mxu1 %v5787_v61  ;;  %v5875_v61 = vld [vmem:[#allocation2 + $0x514] ss:$36 sps:$4 sm:$0xff]  }
  0xa7   :  { %5523 = vmatprep.subr.bf16.mxu1 %v6117_v0 }
  0xa8   :  { %5534 = vmatpush3.bf16.msra.mxu0 %v5796_v62  ;;  %v5882_v62 = vld [vmem:[#allocation2 + $0x5e8] ss:$36 sps:$4 sm:$0xff]  }
  0xa9   :  { %5194 = vmatmul.mubr.msk.bf16.vlgmr.msra.gmra.mrb[60].mxu1 %vm408_vm1, %v6311_v35  ;;  %2546 = vmatprep.subr.bf16.mxu0 %v5802_v63  ;;  %v5890_v63 = vld [vmem:[#allocation2 + $0x5b4] ss:$36 sps:$4 sm:$0xff]  }
  0xaa   :  { %5524 = vmatpush3.bf16.msra.mxu1 %v5793_v2  ;;  %5527 = vmatprep.mubr.msk.bf16.mxu1 %vm6119_vm0, %v6117_v0  ;;  %v5873_v2 = vld [vmem:[#allocation2 + $0x510] ss:$36 sps:$4 sm:$0xff]  }
  0xab   :  { %5525 = vmatprep.subr.bf16.mxu1 %v6117_v0  ;;  %5536 = vmatmul.mubr.msk.bf16.vlgmr.msra.gmra.mrb[60].mxu0 %vm408_vm1, %v6328_v52 }
  0xac   :  { %2547 = vmatpush1.bf16.msra.mxu0 %v5800_v3  ;;  %2578 = vmatprep.mubr.bf16.mxu0 %v6118_v1  ;;  %v5881_v3 = vld [vmem:[#allocation2 + $0x55c] ss:$36 sps:$4 sm:$0xff]  }
  0xad   :  { %2548 = vmatprep.subr.bf16.mxu0 %v5808_v4  ;;  %v6420_v4 = vld [vmem:[%s6658_s0 + $0x28] sm:$0xf] }
  0xae   :  { %5526 = vmatpush3.bf16.msra.mxu1 %v5795_v5  ;;  %v5888_v5 = vld [vmem:[#allocation2 + $0x5b0] ss:$36 sps:$4 sm:$0xff]  }
  0xaf   :  { %2247 = vmatprep.subr.bf16.mxu1 %v5799_v6  ;;  %v5896_v6 = vld [vmem:[#allocation2 + $0x5fc] ss:$36 sps:$4 sm:$0xff]  }
  0xb0   :  { %2549 = vmatpush1.bf16.msra.mxu0 %v5806_v8  ;;  %v5887_v8 = vld [vmem:[#allocation2 + $0x524] ss:$36 sps:$4 sm:$0xff]  }
  0xb1   :  { %5528 = vmatmul.mubr.msk.bf16.vlgmr.msra.gmra.mrb[64].mxu1 %vm408_vm1, %v6311_v35  ;;  %2628 = vmatprep.subr.bf16.mxu0 %v5814_v9  ;;  %v5841_v35 = vld [vmem:[#allocation2 + $0x44c] ss:$36 sps:$4 sm:$0xff]   ;;  %v5894_v9 = vld [vmem:[#allocation2 + $0x5f8] ss:$36 sps:$4 sm:$0xff]  }
  0xb2   :  { %2248 = vmatpush1.bf16.msra.mxu1 %v5797_v7  ;;  %2279 = vmatprep.mubr.bf16.mxu1 %v6118_v1  ;;  %v5879_v7 = vld [vmem:[#allocation2 + $0x558] ss:$36 sps:$4 sm:$0xff]  }
  0xb3   :  { %2249 = vmatprep.subr.bf16.mxu1 %v5805_v10  ;;  %5239 = vmatmul.mubr.msk.bf16.vlgmr.msra.gmra.mrb[64].mxu0 %vm408_vm1, %v6357_v11  ;;  %v5885_v10 = vld [vmem:[#allocation2 + $0x520] ss:$36 sps:$4 sm:$0xff]  }
  0xb4   :  { %2629 = vmatpush1.bf16.msra.mxu0 %v5812_v12  ;;  %2660 = vmatprep.mubr.bf16.mxu0 %v6118_v1  ;;  %v5898_v12 = vld [vmem:[#allocation2 + $0x5c0] ss:$36 sps:$4 sm:$0xff]  }
  0xb5   :  { %2630 = vmatprep.subr.bf16.mxu0 %v5820_v13  ;;  %v5891_v13 = vld [vmem:[#allocation2 + $0x568] ss:$36 sps:$4 sm:$0xff]  }
  0xb6   :  { %2250 = vmatpush1.bf16.msra.mxu1 %v5803_v14  ;;  %v5900_v14 = vld [vmem:[#allocation2 + $0x608] ss:$36 sps:$4 sm:$0xff]  }
  0xb7   :  { %2329 = vmatprep.subr.bf16.mxu1 %v5811_v15  ;;  %v5906_v15 = vld [vmem:[#allocation2 + $0x63c] ss:$36 sps:$4 sm:$0xff]  }
  0xb8   :  { %2631 = vmatpush1.bf16.msra.mxu0 %v5818_v16  ;;  %v5897_v16 = vld [vmem:[#allocation2 + $0x530] ss:$36 sps:$4 sm:$0xff]  }
  0xb9   :  { %5216 = vmatmul.mubr.msk.bf16.vlgmr.msra.gmra.mrb[68].mxu1 %vm408_vm1, %v6328_v52  ;;  %2804 = vmatprep.subr.bf16.mxu0 %v5826_v17  ;;  %v5904_v17 = vld [vmem:[#allocation2 + $0x638] ss:$36 sps:$4 sm:$0xff]  }
  0xba   :  { %2330 = vmatpush1.bf16.msra.mxu1 %v5809_v18  ;;  %2361 = vmatprep.mubr.bf16.mxu1 %v6118_v1  ;;  %v5912_v18 = vld [vmem:[#allocation2 + $0x684] ss:$36 sps:$4 sm:$0xff]  }
  0xbb   :  { %2331 = vmatprep.subr.bf16.mxu1 %v5817_v19  ;;  %5241 = vmatmul.mubr.msk.bf16.vlgmr.msra.gmra.mrb[68].mxu0 %vm408_vm1, %v6357_v11  ;;  %v5899_v19 = vld [vmem:[#allocation2 + $0x578] ss:$36 sps:$4 sm:$0xff]  }
  0xbc   :  { %2805 = vmatpush1.bf16.msra.mxu0 %v5824_v20  ;;  %2836 = vmatprep.mubr.bf16.mxu0 %v6118_v1  ;;  %v5903_v20 = vld [vmem:[#allocation2 + $0x5ac] ss:$36 sps:$4 sm:$0xff]  }
  0xbd   :  { %2806 = vmatprep.subr.bf16.mxu0 %v5832_v21  ;;  %v5910_v21 = vld [vmem:[#allocation2 + $0x680] ss:$36 sps:$4 sm:$0xff]  }
  0xbe   :  { %2332 = vmatpush1.bf16.msra.mxu1 %v5815_v22  ;;  %v5918_v22 = vld [vmem:[#allocation2 + $0x64c] ss:$36 sps:$4 sm:$0xff]  }
  0xbf   :  { %2505 = vmatprep.subr.bf16.mxu1 %v5823_v23  ;;  %v5901_v23 = vld [vmem:[#allocation2 + $0x5a8] ss:$36 sps:$4 sm:$0xff]  }
  0xc0   :  { %2807 = vmatpush1.bf16.msra.mxu0 %v5830_v24  ;;  %v5909_v24 = vld [vmem:[#allocation2 + $0x5f4] ss:$36 sps:$4 sm:$0xff]  }
  0xc1   :  { %5218 = vmatmul.mubr.msk.bf16.vlgmr.msra.gmra.mrb[72].mxu1 %vm408_vm1, %v6328_v52  ;;  %2886 = vmatprep.subr.bf16.mxu0 %v5838_v25  ;;  %v5855_v52 = vld [vmem:[#allocation2 + $0x4d0] ss:$36 sps:$4 sm:$0xff]   ;;  %v6449_v25 = vld [vmem:[%s6658_s0 + $0x2c] sm:$0xf] }
  0xc2   :  { %2506 = vmatpush1.bf16.msra.mxu1 %v5821_v26  ;;  %2537 = vmatprep.mubr.bf16.mxu1 %v6118_v1  ;;  %v5916_v26 = vld [vmem:[#allocation2 + $0x648] ss:$36 sps:$4 sm:$0xff]  }
  0xc3   :  { %2507 = vmatprep.subr.bf16.mxu1 %v5829_v27  ;;  %5261 = vmatmul.mubr.msk.bf16.vlgmr.msra.gmra.mrb[72].mxu0 %vm408_vm1, %v6374_v29  ;;  %v5924_v27 = vld [vmem:[#allocation2 + $0x694] ss:$36 sps:$4 sm:$0xff]  }
  0xc4   :  { %2887 = vmatpush1.bf16.msra.mxu0 %v5836_v30  ;;  %2918 = vmatprep.mubr.bf16.mxu0 %v6118_v1 }
  0xc5   :  { %2888 = vmatprep.subr.bf16.mxu0 %v5844_v32 }
  0xc6   :  { %2508 = vmatpush1.bf16.msra.mxu1 %v5827_v28  ;;  %v5907_v28 = vld [vmem:[#allocation2 + $0x5f0] ss:$36 sps:$4 sm:$0xff]  }
  0xc7   :  { %2587 = vmatprep.subr.bf16.mxu1 %v5835_v31  ;;  %v5922_v31 = vld [vmem:[#allocation2 + $0x690] ss:$36 sps:$4 sm:$0xff]  }
  0xc8   :  { %2889 = vmatpush1.bf16.msra.mxu0 %v5842_v33 }
  0xc9   :  { %5238 = vmatmul.mubr.msk.bf16.vlgmr.msra.gmra.mrb[76].mxu1 %vm408_vm1, %v6357_v11  ;;  %5547 = vmatprep.subr.bf16.mxu0 %v6117_v0 }
  0xca   :  { %2588 = vmatpush1.bf16.msra.mxu1 %v5833_v34  ;;  %2619 = vmatprep.mubr.bf16.mxu1 %v6118_v1 }
  0xcb   :  { %2589 = vmatprep.subr.bf16.mxu1 %v5841_v35  ;;  %5263 = vmatmul.mubr.msk.bf16.vlgmr.msra.gmra.mrb[76].mxu0 %vm408_vm1, %v6374_v29 }
  0xcc   :  { %5548 = vmatpush3.bf16.msra.mxu0 %v5846_v36  ;;  %5551 = vmatprep.mubr.msk.bf16.mxu0 %vm6119_vm0, %v6117_v0  ;;  %v5913_v36 = vld [vmem:[#allocation2 + $0x5b8] ss:$36 sps:$4 sm:$0xff]  }
  0xcd   :  { %5549 = vmatprep.subr.bf16.mxu0 %v6117_v0 }
  0xce   :  { %2590 = vmatpush1.bf16.msra.mxu1 %v5839_v37 }
  0xcf   :  { %5539 = vmatprep.subr.bf16.mxu1 %v6117_v0 }
  0xd0   :  { %5550 = vmatpush3.bf16.msra.mxu0 %v5848_v38 }
  0xd1   :  { %5240 = vmatmul.mubr.msk.bf16.vlgmr.msra.gmra.mrb[80].mxu1 %vm408_vm1, %v6357_v11  ;;  %3144 = vmatprep.subr.bf16.mxu0 %v5854_v39  ;;  %v5921_v39 = vld [vmem:[#allocation2 + $0x604] ss:$36 sps:$4 sm:$0xff]  }
  0xd2   :  { %5540 = vmatpush3.bf16.msra.mxu1 %v5845_v40  ;;  %5543 = vmatprep.mubr.msk.bf16.mxu1 %vm6119_vm0, %v6117_v0 }
  0xd3   :  { %5541 = vmatprep.subr.bf16.mxu1 %v6117_v0  ;;  %5552 = vmatmul.mubr.msk.bf16.vlgmr.msra.gmra.mrb[80].mxu0 %vm408_vm1, %v6374_v29 }
  0xd4   :  { %3145 = vmatpush1.bf16.msra.mxu0 %v5852_v41  ;;  %3176 = vmatprep.mubr.bf16.mxu0 %v6118_v1  ;;  %v5919_v41 = vld [vmem:[#allocation2 + $0x600] ss:$36 sps:$4 sm:$0xff]  }
  0xd5   :  { %3146 = vmatprep.subr.bf16.mxu0 %v5860_v42  ;;  %v5927_v42 = vld [vmem:[#allocation2 + $0x634] ss:$36 sps:$4 sm:$0xff]  }
  0xd6   :  { %5542 = vmatpush3.bf16.msra.mxu1 %v5847_v43 }
  0xd7   :  { %2845 = vmatprep.subr.bf16.mxu1 %v5851_v44 }
  0xd8   :  { %3147 = vmatpush1.bf16.msra.mxu0 %v5858_v45 }
  0xd9   :  { %5544 = vmatmul.mubr.msk.bf16.vlgmr.msra.gmra.mrb[84].mxu1 %vm408_vm1, %v6357_v11  ;;  %3226 = vmatprep.subr.bf16.mxu0 %v5866_v46  ;;  %v5893_v11 = vld [vmem:[#allocation2 + $0x56c] ss:$36 sps:$4 sm:$0xff]  }
  0xda   :  { %2846 = vmatpush1.bf16.msra.mxu1 %v5849_v47  ;;  %2877 = vmatprep.mubr.bf16.mxu1 %v6118_v1 }
  0xdb   :  { %2847 = vmatprep.subr.bf16.mxu1 %v5857_v48  ;;  %5285 = vmatmul.mubr.msk.bf16.vlgmr.msra.gmra.mrb[84].mxu0 %vm408_vm1, %v6403_v49 }
  0xdc   :  { %3227 = vmatpush1.bf16.msra.mxu0 %v5864_v50  ;;  %3258 = vmatprep.mubr.bf16.mxu0 %v6118_v1 }
  0xdd   :  { %3228 = vmatprep.subr.bf16.mxu0 %v5872_v51 }
  0xde   :  { %2848 = vmatpush1.bf16.msra.mxu1 %v5855_v52  ;;  %v5930_v52 = vld [vmem:[#allocation2 + $0x67c] ss:$36 sps:$4 sm:$0xff]  }
  0xdf   :  { %2927 = vmatprep.subr.bf16.mxu1 %v5863_v53 }
  0xe0   :  { %3229 = vmatpush1.bf16.msra.mxu0 %v5870_v54 }
  0xe1   :  { %5262 = vmatmul.mubr.msk.bf16.vlgmr.msra.gmra.mrb[88].mxu1 %vm408_vm1, %v6374_v29  ;;  %3402 = vmatprep.subr.bf16.mxu0 %v5878_v55  ;;  %v5928_v55 = vld [vmem:[#allocation2 + $0x678] ss:$36 sps:$4 sm:$0xff]  }
  0xe2   :  { %2928 = vmatpush1.bf16.msra.mxu1 %v5861_v56  ;;  %2959 = vmatprep.mubr.bf16.mxu1 %v6118_v1  ;;  %v5933_v56 = vld [vmem:[#allocation2 + $0x644] ss:$36 sps:$4 sm:$0xff]  }
  0xe3   :  { %2929 = vmatprep.subr.bf16.mxu1 %v5869_v57  ;;  %5287 = vmatmul.mubr.msk.bf16.vlgmr.msra.gmra.mrb[88].mxu0 %vm408_vm1, %v6403_v49 }
  0xe4   :  { %3403 = vmatpush1.bf16.msra.mxu0 %v5876_v58  ;;  %3434 = vmatprep.mubr.bf16.mxu0 %v6118_v1 }
  0xe5   :  { %3404 = vmatprep.subr.bf16.mxu0 %v5884_v59 }
  0xe6   :  { %2930 = vmatpush1.bf16.msra.mxu1 %v5867_v60  ;;  %v5931_v60 = vld [vmem:[#allocation2 + $0x640] ss:$36 sps:$4 sm:$0xff]  }
  0xe7   :  { %3103 = vmatprep.subr.bf16.mxu1 %v5875_v61 }
  0xe8   :  { %3405 = vmatpush1.bf16.msra.mxu0 %v5882_v62 }
  0xe9   :  { %5264 = vmatmul.mubr.msk.bf16.vlgmr.msra.gmra.mrb[92].mxu1 %vm408_vm1, %v6374_v29  ;;  %3484 = vmatprep.subr.bf16.mxu0 %v5890_v63  ;;  %v5915_v29 = vld [vmem:[#allocation2 + $0x5bc] ss:$36 sps:$4 sm:$0xff]  }
  0xea   :  { %3104 = vmatpush1.bf16.msra.mxu1 %v5873_v2  ;;  %3135 = vmatprep.mubr.bf16.mxu1 %v6118_v1  ;;  %v5936_v2 = vld [vmem:[#allocation2 + $0x68c] ss:$36 sps:$4 sm:$0xff]  }
  0xeb   :  { %3105 = vmatprep.subr.bf16.mxu1 %v5881_v3  ;;  %5307 = vmatmul.mubr.msk.bf16.vlgmr.msra.gmra.mrb[92].mxu0 %vm408_vm1, %v6420_v4 }
  0xec   :  { %3485 = vmatpush1.bf16.msra.mxu0 %v5888_v5  ;;  %3516 = vmatprep.mubr.bf16.mxu0 %v6118_v1  ;;  %v5934_v5 = vld [vmem:[#allocation2 + $0x688] ss:$36 sps:$4 sm:$0xff]  }
  0xed   :  { %3486 = vmatprep.subr.bf16.mxu0 %v5896_v6 }
  0xee   :  { %3106 = vmatpush1.bf16.msra.mxu1 %v5879_v7 }
  0xef   :  { %3185 = vmatprep.subr.bf16.mxu1 %v5887_v8 }
  0xf0   :  { %3487 = vmatpush1.bf16.msra.mxu0 %v5894_v9 }
  0xf1   :  { %5284 = vmatmul.mubr.msk.bf16.vlgmr.msra.gmra.mrb[96].mxu1 %vm408_vm1, %v6403_v49  ;;  %5563 = vmatprep.subr.bf16.mxu0 %v6117_v0 }
  0xf2   :  { %3186 = vmatpush1.bf16.msra.mxu1 %v5885_v10  ;;  %3217 = vmatprep.mubr.bf16.mxu1 %v6118_v1 }
  0xf3   :  { %3187 = vmatprep.subr.bf16.mxu1 %v5893_v11  ;;  %5309 = vmatmul.mubr.msk.bf16.vlgmr.msra.gmra.mrb[96].mxu0 %vm408_vm1, %v6420_v4  ;;  %v5937_v11 = vld [vmem:[#allocation2 + $0x650] ss:$36 sps:$4 sm:$0xff]  }
  0xf4   :  { %5564 = vmatpush3.bf16.msra.mxu0 %v5898_v12  ;;  %5567 = vmatprep.mubr.msk.bf16.mxu0 %vm6119_vm0, %v6117_v0 }
  0xf5   :  { %5565 = vmatprep.subr.bf16.mxu0 %v6117_v0 }
  0xf6   :  { %3188 = vmatpush1.bf16.msra.mxu1 %v5891_v13 }
  0xf7   :  { %5555 = vmatprep.subr.bf16.mxu1 %v6117_v0 }
  0xf8   :  { %5566 = vmatpush3.bf16.msra.mxu0 %v5900_v14 }
  0xf9   :  { %5286 = vmatmul.mubr.msk.bf16.vlgmr.msra.gmra.mrb[100].mxu1 %vm408_vm1, %v6403_v49  ;;  %3742 = vmatprep.subr.bf16.mxu0 %v5906_v15 }
  0xfa   :  { %5556 = vmatpush3.bf16.msra.mxu1 %v5897_v16  ;;  %5559 = vmatprep.mubr.msk.bf16.mxu1 %vm6119_vm0, %v6117_v0 }
  0xfb   :  { %5557 = vmatprep.subr.bf16.mxu1 %v6117_v0  ;;  %5568 = vmatmul.mubr.msk.bf16.vlgmr.msra.gmra.mrb[100].mxu0 %vm408_vm1, %v6420_v4 }
  0xfc   :  { %3743 = vmatpush1.bf16.msra.mxu0 %v5904_v17  ;;  %3774 = vmatprep.mubr.bf16.mxu0 %v6118_v1  ;;  %v5938_v17 = vld [vmem:[#allocation2 + $0x698] ss:$36 sps:$4 sm:$0xff]  }
  0xfd   :  { %3744 = vmatprep.subr.bf16.mxu0 %v5912_v18 }
  0xfe   :  { %5558 = vmatpush3.bf16.msra.mxu1 %v5899_v19 }
  0xff   :  { %3443 = vmatprep.subr.bf16.mxu1 %v5903_v20 }
 0x100   :  { %3745 = vmatpush1.bf16.msra.mxu0 %v5910_v21 }
 0x101   :  { %5560 = vmatmul.mubr.msk.bf16.vlgmr.msra.gmra.mrb[104].mxu1 %vm408_vm1, %v6403_v49  ;;  %3824 = vmatprep.subr.bf16.mxu0 %v5918_v22  ;;  %v5925_v49 = vld [vmem:[#allocation2 + $0x630] ss:$36 sps:$4 sm:$0xff]  }
 0x102   :  { %3444 = vmatpush1.bf16.msra.mxu1 %v5901_v23  ;;  %3475 = vmatprep.mubr.bf16.mxu1 %v6118_v1 }
 0x103   :  { %3445 = vmatprep.subr.bf16.mxu1 %v5909_v24  ;;  %5331 = vmatmul.mubr.msk.bf16.vlgmr.msra.gmra.mrb[104].mxu0 %vm408_vm1, %v6449_v25 }
 0x104   :  { %v6456_v30 = vpop.f32.mrb[0].mxu1  ;;  %3825 = vmatpush1.bf16.msra.mxu0 %v5916_v26  ;;  %3856 = vmatprep.mubr.bf16.mxu0 %v6118_v1 }
 0x105   :  { %v6459_v32 = vpop.f32.mrb[1].mxu1  ;;  %v6461_v33 = vpop.f32.mrb[0].mxu0  ;;  %3826 = vmatprep.subr.bf16.mxu0 %v5924_v27 }
 0x106   :  { %v450_v34 = vpop.f32.mrb[2].mxu1  ;;  %3446 = vmatpush1.bf16.msra.mxu1 %v5907_v28  ;;  %v5489_v35 = vpop.f32.mrb[1].mxu0 }
 0x107   :  { %v451_v37 = vpop.f32.mrb[3].mxu1  ;;  %3525 = vmatprep.subr.bf16.mxu1 %v5915_v29  ;;  %v613_v38 = vpop.f32.mrb[2].mxu0 }
 0x108   :  { %v5490_v40 = vpop.f32.mrb[3].mxu0  ;;  %3827 = vmatpush1.bf16.msra.mxu0 %v5922_v31 }
 0x109   :  { %5308 = vmatmul.mubr.msk.bf16.vlgmr.msra.gmra.mrb[108].mxu1 %vm408_vm1, %v6420_v4 }
 0x10a   :  { %3526 = vmatpush1.bf16.msra.mxu1 %v5913_v36  ;;  %3557 = vmatprep.mubr.bf16.mxu1 %v6118_v1 }
 0x10b   :  { %3527 = vmatprep.subr.bf16.mxu1 %v5921_v39  ;;  %5333 = vmatmul.mubr.msk.bf16.vlgmr.msra.gmra.mrb[108].mxu0 %vm408_vm1, %v6449_v25 }
 0x10c   :  { %v487_v43 = vpop.f32.mrb[4].mxu1 }
 0x10d   :  { %v786_v44 = vpop.f32.mrb[4].mxu0  ;;  %v489_v45 = vpop.f32.mrb[5].mxu1 }
 0x10e   :  { %v6468_v46 = vadd.f32 %v786_v44, %v487_v43  ;;  %v788_v47 = vpop.f32.mrb[5].mxu0  ;;  %v491_v48 = vpop.f32.mrb[6].mxu1  ;;  %3528 = vmatpush1.bf16.msra.mxu1 %v5919_v41 }
 0x10f   :  { %v6470_v50 = vadd.f32 %v788_v47, %v489_v45  ;;  %v492_v51 = vpop.f32.mrb[7].mxu1  ;;  %3701 = vmatprep.subr.bf16.mxu1 %v5927_v42  ;;  %v790_v53 = vpop.f32.mrb[6].mxu0 }
 0x110   :  { %v791_v54 = vpop.f32.mrb[7].mxu0 }
 0x111   :  { %5310 = vmatmul.mubr.msk.bf16.vlgmr.msra.gmra.mrb[112].mxu1 %vm408_vm1, %v6420_v4 }
 0x112   :  { %3702 = vmatpush1.bf16.msra.mxu1 %v5925_v49  ;;  %3733 = vmatprep.mubr.bf16.mxu1 %v6118_v1 }
 0x113   :  { %3703 = vmatprep.subr.bf16.mxu1 %v5930_v52 }
 0x114   :  { %v528_v57 = vpop.f32.mrb[8].mxu1 }
 0x115   :  { %v530_v58 = vpop.f32.mrb[9].mxu1 }
 0x116   :  { %v532_v59 = vpop.f32.mrb[10].mxu1  ;;  %3704 = vmatpush1.bf16.msra.mxu1 %v5928_v55  ;;  %v868_v61 = vpop.f32.mrb[8].mxu0 }
 0x117   :  { %v533_v62 = vpop.f32.mrb[11].mxu1  ;;  %3783 = vmatprep.subr.bf16.mxu1 %v5933_v56  ;;  %v870_v63 = vpop.f32.mrb[9].mxu0 }
 0x118   :  { %v872_v3 = vpop.f32.mrb[10].mxu0 }
 0x119   :  { %5330 = vmatmul.mubr.msk.bf16.vlgmr.msra.gmra.mrb[116].mxu1 %vm408_vm1, %v6449_v25  ;;  %v873_v4 = vpop.f32.mrb[11].mxu0 }
 0x11a   :  { %3784 = vmatpush1.bf16.msra.mxu1 %v5931_v60  ;;  %3815 = vmatprep.mubr.bf16.mxu1 %v6118_v1 }
 0x11b   :  { %3785 = vmatprep.subr.bf16.mxu1 %v5936_v2 }
 0x11c   :  { %v569_v6 = vpop.f32.mrb[12].mxu1 }
 0x11d   :  { %v6478_v7 = vadd.f32 %v868_v61, %v569_v6  ;;  %v571_v8 = vpop.f32.mrb[13].mxu1 }
 0x11e   :  { %v6480_v9 = vadd.f32 %v870_v63, %v571_v8  ;;  %v573_v10 = vpop.f32.mrb[14].mxu1  ;;  %3786 = vmatpush1.bf16.msra.mxu1 %v5934_v5  ;;  %v1044_v12 = vpop.f32.mrb[12].mxu0 }
 0x11f   :  { %v574_v13 = vpop.f32.mrb[15].mxu1  ;;  %5571 = vmatprep.subr.bf16.mxu1 %v6117_v0  ;;  %v1046_v14 = vpop.f32.mrb[13].mxu0 }
 0x120   :  { %v1048_v15 = vpop.f32.mrb[14].mxu0 }
 0x121   :  { %5332 = vmatmul.mubr.msk.bf16.vlgmr.msra.gmra.mrb[120].mxu1 %vm408_vm1, %v6449_v25  ;;  %v1049_v16 = vpop.f32.mrb[15].mxu0 }
 0x122   :  { %5572 = vmatpush3.bf16.msra.mxu1 %v5937_v11  ;;  %5575 = vmatprep.mubr.msk.bf16.mxu1 %vm6119_vm0, %v6117_v0 }
 0x123   :  { %5573 = vmatprep.subr.bf16.mxu1 %v6117_v0 }
 0x124   :  { %v745_v18 = vpop.f32.mrb[16].mxu1 }
 0x125   :  { %v3905_v19 = vadd.f32 %v745_v18, %v6456_v30  ;;  %v747_v20 = vpop.f32.mrb[17].mxu1 }
 0x126   :  { %v3916_v21 = vadd.f32 %v747_v20, %v6459_v32  ;;  %v749_v22 = vpop.f32.mrb[18].mxu1  ;;  %5574 = vmatpush3.bf16.msra.mxu1 %v5938_v17  ;;  %v1126_v23 = vpop.f32.mrb[16].mxu0 }
 0x127   :  { %v3906_v24 = vadd.f32 %v3905_v19, %v1044_v12  ;;  %v750_v26 = vpop.f32.mrb[19].mxu1  ;;  %v1128_v27 = vpop.f32.mrb[17].mxu0 }
 0x128   :  { %v3917_v28 = vadd.f32 %v3916_v21, %v1046_v14  ;;  %v1130_v29 = vpop.f32.mrb[18].mxu0 }
 0x129   :  { %5576 = vmatmul.mubr.msk.bf16.vlgmr.msra.gmra.mrb[124].mxu1 %vm408_vm1, %v6449_v25  ;;  %v1131_v31 = vpop.f32.mrb[19].mxu0 }
 0x12a   :  { %4281 = vmatprep.mubr.f32.mxu1 %v6117_v0 }
 0x12c   :  { %v827_v34 = vpop.f32.mrb[20].mxu1 }
 0x12d   :  { %v3949_v35 = vadd.f32 %v827_v34, %v528_v57  ;;  %v829_v30 = vpop.f32.mrb[21].mxu1 }
 0x12e   :  { %v3960_v36 = vadd.f32 %v829_v30, %v530_v58  ;;  %v831_v37 = vpop.f32.mrb[22].mxu1  ;;  %v1208_v32 = vpop.f32.mrb[20].mxu0 }
 0x12f   :  { %v3950_v38 = vadd.f32 %v3949_v35, %v1126_v23  ;;  %v832_v39 = vpop.f32.mrb[23].mxu1  ;;  %v5505_v40 = vpop.f32.mrb[21].mxu0 }
 0x130   :  { %v3961_v41 = vadd.f32 %v3960_v36, %v1128_v27  ;;  %v1211_v42 = vpop.f32.mrb[22].mxu0 }
 0x131   :  { %v5506_v43 = vpop.f32.mrb[23].mxu0 }
 0x134   :  { %v909_v44 = vpop.f32.mrb[24].mxu1 }
 0x135   :  { %v3993_v45 = vadd.f32 %v909_v44, %v6461_v33  ;;  %v5497_v47 = vpop.f32.mrb[25].mxu1 }
 0x136   :  { %v912_v25 = vpop.f32.mrb[26].mxu1  ;;  %v1384_v48 = vpop.f32.mrb[24].mxu0 }
 0x137   :  { %v3994_v49 = vadd.f32 %v3993_v45, %v1208_v32  ;;  %v5498_v51 = vpop.f32.mrb[27].mxu1  ;;  %v1386_v52 = vpop.f32.mrb[25].mxu0 }
 0x138   :  { %v1388_v53 = vpop.f32.mrb[26].mxu0 }
 0x139   :  { %v1389_v54 = vpop.f32.mrb[27].mxu0 }
 0x13c   :  { %v1085_v55 = vpop.f32.mrb[28].mxu1 }
 0x13d   :  { %v3928_v56 = vadd.f32 %v6468_v46, %v1085_v55  ;;  %v1087_v57 = vpop.f32.mrb[29].mxu1 }
 0x13e   :  { %v3939_v58 = vadd.f32 %v6470_v50, %v1087_v57  ;;  %v1089_v59 = vpop.f32.mrb[30].mxu1  ;;  %v1466_v60 = vpop.f32.mrb[28].mxu0 }
 0x13f   :  { %v3929_v61 = vadd.f32 %v3928_v56, %v1384_v48  ;;  %v1090_v62 = vpop.f32.mrb[31].mxu1  ;;  %v1468_v63 = vpop.f32.mrb[29].mxu0 }
 0x140   :  { %v3940_v33 = vadd.f32 %v3939_v58, %v1386_v52  ;;  %v1470_v2 = vpop.f32.mrb[30].mxu0 }
 0x141   :  { %v1471_v3 = vpop.f32.mrb[31].mxu0 }
 0x144   :  { %v1167_v4 = vpop.f32.mrb[32].mxu1 }
 0x145   :  { %v3972_v5 = vadd.f32 %v6478_v7, %v1167_v4  ;;  %v1169_v6 = vpop.f32.mrb[33].mxu1 }
 0x146   :  { %v3983_v8 = vadd.f32 %v6480_v9, %v1169_v6  ;;  %v1171_v10 = vpop.f32.mrb[34].mxu1  ;;  %v1642_v11 = vpop.f32.mrb[32].mxu0 }
 0x147   :  { %v3973_v46 = vadd.f32 %v3972_v5, %v1466_v60  ;;  %v1172_v12 = vpop.f32.mrb[35].mxu1  ;;  %v1644_v13 = vpop.f32.mrb[33].mxu0 }
 0x148   :  { %v3984_v50 = vadd.f32 %v3983_v8, %v1468_v63  ;;  %v1646_v14 = vpop.f32.mrb[34].mxu0 }
 0x149   :  { %v1647_v15 = vpop.f32.mrb[35].mxu0 }
 0x14c   :  { %v1343_v16 = vpop.f32.mrb[36].mxu1 }
 0x14d   :  { %v3907_v17 = vadd.f32 %v3906_v24, %v1343_v16  ;;  %v1345_v18 = vpop.f32.mrb[37].mxu1 }
 0x14e   :  { %v3918_v19 = vadd.f32 %v3917_v28, %v1345_v18  ;;  %v1347_v20 = vpop.f32.mrb[38].mxu1  ;;  %v1724_v21 = vpop.f32.mrb[36].mxu0 }
 0x14f   :  { %v3908_v22 = vadd.f32 %v3907_v17, %v1642_v11  ;;  %v1348_v23 = vpop.f32.mrb[39].mxu1  ;;  %v1726_v7 = vpop.f32.mrb[37].mxu0 }
 0x150   :  { %v3919_v26 = vadd.f32 %v3918_v19, %v1644_v13  ;;  %v1728_v27 = vpop.f32.mrb[38].mxu0 }
 0x151   :  { %v1729_v9 = vpop.f32.mrb[39].mxu0 }
 0x154   :  { %v1425_v29 = vpop.f32.mrb[40].mxu1 }
 0x155   :  { %v3951_v31 = vadd.f32 %v3950_v38, %v1425_v29  ;;  %v1427_v34 = vpop.f32.mrb[41].mxu1 }
 0x156   :  { %v3962_v35 = vadd.f32 %v3961_v41, %v1427_v34  ;;  %v1429_v30 = vpop.f32.mrb[42].mxu1  ;;  %v1806_v36 = vpop.f32.mrb[40].mxu0 }
 0x157   :  { %v3952_v37 = vadd.f32 %v3951_v31, %v1724_v21  ;;  %v1430_v32 = vpop.f32.mrb[43].mxu1  ;;  %v5521_v39 = vpop.f32.mrb[41].mxu0 }
 0x158   :  { %v3963_v24 = vadd.f32 %v3962_v35, %v1726_v7  ;;  %v1809_v40 = vpop.f32.mrb[42].mxu0 }
 0x159   :  { %v5522_v28 = vpop.f32.mrb[43].mxu0 }
 0x15c   :  { %v1507_v42 = vpop.f32.mrb[44].mxu1 }
 0x15d   :  { %v3995_v43 = vadd.f32 %v3994_v49, %v1507_v42  ;;  %v5513_v44 = vpop.f32.mrb[45].mxu1 }
 0x15e   :  { %v1510_v45 = vpop.f32.mrb[46].mxu1  ;;  %v1982_v47 = vpop.f32.mrb[44].mxu0 }
 0x15f   :  { %v3996_v25 = vadd.f32 %v3995_v43, %v1806_v36  ;;  %v5514_v48 = vpop.f32.mrb[47].mxu1  ;;  %v1984_v51 = vpop.f32.mrb[45].mxu0 }
 0x160   :  { %v1986_v52 = vpop.f32.mrb[46].mxu0 }
 0x161   :  { %v1987_v38 = vpop.f32.mrb[47].mxu0 }
 0x164   :  { %v1683_v53 = vpop.f32.mrb[48].mxu1 }
 0x165   :  { %v3930_v41 = vadd.f32 %v3929_v61, %v1683_v53  ;;  %v1685_v54 = vpop.f32.mrb[49].mxu1 }
 0x166   :  { %v3941_v55 = vadd.f32 %v3940_v33, %v1685_v54  ;;  %v1687_v56 = vpop.f32.mrb[50].mxu1  ;;  %v2064_v57 = vpop.f32.mrb[48].mxu0 }
 0x167   :  { %v3931_v58 = vadd.f32 %v3930_v41, %v1982_v47  ;;  %v1688_v59 = vpop.f32.mrb[51].mxu1  ;;  %v2066_v60 = vpop.f32.mrb[49].mxu0 }
 0x168   :  { %v3942_v62 = vadd.f32 %v3941_v55, %v1984_v51  ;;  %v2068_v63 = vpop.f32.mrb[50].mxu0 }
 0x169   :  { %v2069_v49 = vpop.f32.mrb[51].mxu0 }
 0x16c   :  { %v1765_v2 = vpop.f32.mrb[52].mxu1 }
 0x16d   :  { %v3974_v3 = vadd.f32 %v3973_v46, %v1765_v2  ;;  %v1767_v4 = vpop.f32.mrb[53].mxu1 }
 0x16e   :  { %v3985_v5 = vadd.f32 %v3984_v50, %v1767_v4  ;;  %v1769_v6 = vpop.f32.mrb[54].mxu1  ;;  %v2240_v8 = vpop.f32.mrb[52].mxu0 }
 0x16f   :  { %v3975_v10 = vadd.f32 %v3974_v3, %v2064_v57  ;;  %v1770_v11 = vpop.f32.mrb[55].mxu1  ;;  %v2242_v12 = vpop.f32.mrb[53].mxu0 }
 0x170   :  { %v3986_v61 = vadd.f32 %v3985_v5, %v2066_v60  ;;  %v2244_v13 = vpop.f32.mrb[54].mxu0 }
 0x171   :  { %v2245_v33 = vpop.f32.mrb[55].mxu0 }
 0x174   :  { %v1941_v14 = vpop.f32.mrb[56].mxu1 }
 0x175   :  { %v3909_v15 = vadd.f32 %v3908_v22, %v1941_v14  ;;  %v1943_v16 = vpop.f32.mrb[57].mxu1 }
 0x176   :  { %v3920_v17 = vadd.f32 %v3919_v26, %v1943_v16  ;;  %v1945_v18 = vpop.f32.mrb[58].mxu1  ;;  %v2322_v19 = vpop.f32.mrb[56].mxu0 }
 0x177   :  { %v3910_v20 = vadd.f32 %v3909_v15, %v2240_v8  ;;  %v1946_v21 = vpop.f32.mrb[59].mxu1  ;;  %v2324_v23 = vpop.f32.mrb[57].mxu0 }
 0x178   :  { %v3921_v46 = vadd.f32 %v3920_v17, %v2242_v12  ;;  %v2326_v7 = vpop.f32.mrb[58].mxu0 }
 0x179   :  { %v2327_v50 = vpop.f32.mrb[59].mxu0 }
 0x17c   :  { %v2023_v27 = vpop.f32.mrb[60].mxu1 }
 0x17d   :  { %v3953_v9 = vadd.f32 %v3952_v37, %v2023_v27  ;;  %v2025_v29 = vpop.f32.mrb[61].mxu1 }
 0x17e   :  { %v3964_v31 = vadd.f32 %v3963_v24, %v2025_v29  ;;  %v2027_v34 = vpop.f32.mrb[62].mxu1  ;;  %v2404_v35 = vpop.f32.mrb[60].mxu0 }
 0x17f   :  { %v3954_v30 = vadd.f32 %v3953_v9, %v2322_v19  ;;  %v2028_v36 = vpop.f32.mrb[63].mxu1  ;;  %v5537_v32 = vpop.f32.mrb[61].mxu0 }
 0x180   :  { %v3965_v22 = vadd.f32 %v3964_v31, %v2324_v23  ;;  %v2407_v39 = vpop.f32.mrb[62].mxu0 }
 0x181   :  { %v5538_v26 = vpop.f32.mrb[63].mxu0 }
 0x184   :  { %v2105_v40 = vpop.f32.mrb[64].mxu1 }
 0x185   :  { %v3997_v28 = vadd.f32 %v3996_v25, %v2105_v40  ;;  %v5529_v42 = vpop.f32.mrb[65].mxu1 }
 0x186   :  { %v2108_v43 = vpop.f32.mrb[66].mxu1  ;;  %v2580_v44 = vpop.f32.mrb[64].mxu0 }
 0x187   :  { %v3998_v45 = vadd.f32 %v3997_v28, %v2404_v35  ;;  %v5530_v47 = vpop.f32.mrb[67].mxu1  ;;  %v2582_v48 = vpop.f32.mrb[65].mxu0 }
 0x188   :  { %v2584_v51 = vpop.f32.mrb[66].mxu0 }
 0x189   :  { %v2585_v37 = vpop.f32.mrb[67].mxu0 }
 0x18c   :  { %v2281_v52 = vpop.f32.mrb[68].mxu1 }
 0x18d   :  { %v3932_v24 = vadd.f32 %v3931_v58, %v2281_v52  ;;  %v2283_v38 = vpop.f32.mrb[69].mxu1 }
 0x18e   :  { %v3943_v53 = vadd.f32 %v3942_v62, %v2283_v38  ;;  %v2285_v41 = vpop.f32.mrb[70].mxu1  ;;  %v2662_v54 = vpop.f32.mrb[68].mxu0 }
 0x18f   :  { %v3933_v55 = vadd.f32 %v3932_v24, %v2580_v44  ;;  %v2286_v56 = vpop.f32.mrb[71].mxu1  ;;  %v2664_v57 = vpop.f32.mrb[69].mxu0 }
 0x190   :  { %v3944_v59 = vadd.f32 %v3943_v53, %v2582_v48  ;;  %v2666_v60 = vpop.f32.mrb[70].mxu0 }
 0x191   :  { %v2667_v25 = vpop.f32.mrb[71].mxu0 }
 0x194   :  { %v2363_v63 = vpop.f32.mrb[72].mxu1 }
 0x195   :  { %v3976_v49 = vadd.f32 %v3975_v10, %v2363_v63  ;;  %v2365_v2 = vpop.f32.mrb[73].mxu1 }
 0x196   :  { %v3987_v3 = vadd.f32 %v3986_v61, %v2365_v2  ;;  %v2367_v4 = vpop.f32.mrb[74].mxu1  ;;  %v2838_v5 = vpop.f32.mrb[72].mxu0 }
 0x197   :  { %v3977_v6 = vadd.f32 %v3976_v49, %v2662_v54  ;;  %v2368_v8 = vpop.f32.mrb[75].mxu1  ;;  %v2840_v11 = vpop.f32.mrb[73].mxu0 }
 0x198   :  { %v3988_v58 = vadd.f32 %v3987_v3, %v2664_v57  ;;  %v2842_v12 = vpop.f32.mrb[74].mxu0 }
 0x199   :  { %v2843_v62 = vpop.f32.mrb[75].mxu0 }
 0x19c   :  { %v2539_v13 = vpop.f32.mrb[76].mxu1 }
 0x19d   :  { %v3911_v33 = vadd.f32 %v3910_v20, %v2539_v13  ;;  %v2541_v14 = vpop.f32.mrb[77].mxu1 }
 0x19e   :  { %v3922_v15 = vadd.f32 %v3921_v46, %v2541_v14  ;;  %v2543_v16 = vpop.f32.mrb[78].mxu1  ;;  %v2920_v17 = vpop.f32.mrb[76].mxu0 }
 0x19f   :  { %v3912_v18 = vadd.f32 %v3911_v33, %v2838_v5  ;;  %v2544_v19 = vpop.f32.mrb[79].mxu1  ;;  %v2922_v21 = vpop.f32.mrb[77].mxu0 }
 0x1a0   :  { %v3923_v10 = vadd.f32 %v3922_v15, %v2840_v11  ;;  %v2924_v23 = vpop.f32.mrb[78].mxu0 }
 0x1a1   :  { %v2925_v61 = vpop.f32.mrb[79].mxu0 }
 0x1a4   :  { %v2621_v7 = vpop.f32.mrb[80].mxu1 }
 0x1a5   :  { %v3955_v50 = vadd.f32 %v3954_v30, %v2621_v7  ;;  %v2623_v27 = vpop.f32.mrb[81].mxu1 }
 0x1a6   :  { %v3966_v9 = vadd.f32 %v3965_v22, %v2623_v27  ;;  %v2625_v29 = vpop.f32.mrb[82].mxu1  ;;  %v3002_v31 = vpop.f32.mrb[80].mxu0 }
 0x1a7   :  { %v3956_v34 = vadd.f32 %v3955_v50, %v2920_v17  ;;  %v2626_v35 = vpop.f32.mrb[83].mxu1  ;;  %v5553_v36 = vpop.f32.mrb[81].mxu0 }
 0x1a8   :  { %v3967_v20 = vadd.f32 %v3966_v9, %v2922_v21  ;;  %v3005_v32 = vpop.f32.mrb[82].mxu0 }
 0x1a9   :  { %v5554_v46 = vpop.f32.mrb[83].mxu0 }
 0x1ac   :  { %v2703_v39 = vpop.f32.mrb[84].mxu1 }
 0x1ad   :  { %v3999_v26 = vadd.f32 %v3998_v45, %v2703_v39  ;;  %v5545_v40 = vpop.f32.mrb[85].mxu1 }
 0x1ae   :  { %v2706_v28 = vpop.f32.mrb[86].mxu1  ;;  %v3178_v42 = vpop.f32.mrb[84].mxu0 }
 0x1af   :  { %v4000_v43 = vadd.f32 %v3999_v26, %v3002_v31  ;;  %v5546_v44 = vpop.f32.mrb[87].mxu1  ;;  %v3180_v47 = vpop.f32.mrb[85].mxu0 }
 0x1b0   :  { %v3182_v48 = vpop.f32.mrb[86].mxu0 }
 0x1b1   :  { %v3183_v30 = vpop.f32.mrb[87].mxu0  ;;  %v4008_v48 = vlaneseq }
 0x1b4   :  { %v2879_v51 = vpop.f32.mrb[88].mxu1 }
 0x1b5   :  { %v3934_v22 = vadd.f32 %v3933_v55, %v2879_v51  ;;  %v2881_v37 = vpop.f32.mrb[89].mxu1 }
 0x1b6   :  { %v3945_v52 = vadd.f32 %v3944_v59, %v2881_v37  ;;  %v2883_v24 = vpop.f32.mrb[90].mxu1  ;;  %v3260_v38 = vpop.f32.mrb[88].mxu0 }
 0x1b7   :  { %v3935_v53 = vadd.f32 %v3934_v22, %v3178_v42  ;;  %v2884_v41 = vpop.f32.mrb[91].mxu1  ;;  %v3262_v54 = vpop.f32.mrb[89].mxu0 }
 0x1b8   :  { %v3946_v56 = vadd.f32 %v3945_v52, %v3180_v47  ;;  %v3264_v57 = vpop.f32.mrb[90].mxu0  ;;  %v6506_v41 = vshrl.u32 %v4008_v48, 7 }
 0x1b9   :  { %v3265_v45 = vpop.f32.mrb[91].mxu0 }
 0x1bc   :  { %v2961_v60 = vpop.f32.mrb[92].mxu1 }
 0x1bd   :  { %v3978_v25 = vadd.f32 %v3977_v6, %v2961_v60  ;;  %v2963_v63 = vpop.f32.mrb[93].mxu1  ;;  %v4038_v60 = vsub.s32 7, %v6506_v41 }
 0x1be   :  { %v3989_v49 = vadd.f32 %v3988_v58, %v2963_v63  ;;  %v2965_v2 = vpop.f32.mrb[94].mxu1  ;;  %v3436_v3 = vpop.f32.mrb[92].mxu0 }
 0x1bf   :  { %v3979_v4 = vadd.f32 %v3978_v25, %v3260_v38  ;;  %v2966_v5 = vpop.f32.mrb[95].mxu1  ;;  %v3438_v8 = vpop.f32.mrb[93].mxu0  ;;  %v4034_v25 = vsub.s32 6, %v6506_v41 }
 0x1c0   :  { %v3990_v55 = vadd.f32 %v3989_v49, %v3262_v54  ;;  %v3440_v11 = vpop.f32.mrb[94].mxu0 }
 0x1c1   :  { %v3441_v59 = vpop.f32.mrb[95].mxu0 }
 0x1c4   :  { %v3137_v12 = vpop.f32.mrb[96].mxu1 }
 0x1c5   :  { %v3913_v62 = vadd.f32 %v3912_v18, %v3137_v12  ;;  %v3139_v13 = vpop.f32.mrb[97].mxu1 }
 0x1c6   :  { %v3924_v33 = vadd.f32 %v3923_v10, %v3139_v13  ;;  %v3141_v14 = vpop.f32.mrb[98].mxu1  ;;  %v3518_v15 = vpop.f32.mrb[96].mxu0 }
 0x1c7   :  { %v3914_v16 = vadd.f32 %v3913_v62, %v3436_v3  ;;  %v3142_v17 = vpop.f32.mrb[99].mxu1  ;;  %v3520_v19 = vpop.f32.mrb[97].mxu0  ;;  %v4014_v62 = vsub.s32 1, %v6506_v41 }
 0x1c8   :  { %v3925_v6 = vadd.f32 %v3924_v33, %v3438_v8  ;;  %v3522_v21 = vpop.f32.mrb[98].mxu0 }
 0x1c9   :  { %v3523_v58 = vpop.f32.mrb[99].mxu0 }
 0x1ca   :  { %v4026_v58 = vsub.s32 4, %v6506_v41 }
 0x1cc   :  { %v3219_v23 = vpop.f32.mrb[100].mxu1 }
 0x1cd   :  { %v3957_v61 = vadd.f32 %v3956_v34, %v3219_v23  ;;  %v3221_v7 = vpop.f32.mrb[101].mxu1  ;;  %v4022_v23 = vsub.s32 3, %v6506_v41 }
 0x1ce   :  { %v3968_v50 = vadd.f32 %v3967_v20, %v3221_v7  ;;  %v3223_v27 = vpop.f32.mrb[102].mxu1  ;;  %v3600_v9 = vpop.f32.mrb[100].mxu0  ;;  %v4010_v7 = vsub.s32 0, %v6506_v41 }
 0x1cf   :  { %v6498_v29 = vadd.f32 %v3957_v61, %v3518_v15  ;;  %v3224_v31 = vpop.f32.mrb[103].mxu1  ;;  %v5569_v18 = vpop.f32.mrb[101].mxu0 }
 0x1d0   :  { %v6500_v35 = vadd.f32 %v3968_v50, %v3520_v19  ;;  %v3603_v10 = vpop.f32.mrb[102].mxu0 }
 0x1d1   :  { %v5570_v36 = vpop.f32.mrb[103].mxu0 }
 0x1d4   :  { %v3301_v32 = vpop.f32.mrb[104].mxu1 }
 0x1d5   :  { %v4001_v46 = vadd.f32 %v4000_v43, %v3301_v32  ;;  %v5561_v39 = vpop.f32.mrb[105].mxu1 }
 0x1d6   :  { %v3304_v26 = vpop.f32.mrb[106].mxu1  ;;  %v3776_v40 = vpop.f32.mrb[104].mxu0 }
 0x1d7   :  { %v6502_v28 = vadd.f32 %v4001_v46, %v3600_v9  ;;  %v5562_v34 = vpop.f32.mrb[107].mxu1  ;;  %v3778_v42 = vpop.f32.mrb[105].mxu0 }
 0x1d8   :  { %v3780_v20 = vpop.f32.mrb[106].mxu0 }
 0x1d9   :  { %v3781_v44 = vpop.f32.mrb[107].mxu0 }
 0x1dc   :  { %v3477_v47 = vpop.f32.mrb[108].mxu1 }
 0x1dd   :  { %v3936_v30 = vadd.f32 %v3935_v53, %v3477_v47  ;;  %v3479_v51 = vpop.f32.mrb[109].mxu1  ;;  %v4004_v53 = vld [vmem:[%s6660_s2] sm:$0xff] }
 0x1de   :  { %v3947_v22 = vadd.f32 %v3946_v56, %v3479_v51  ;;  %v3481_v37 = vpop.f32.mrb[110].mxu1  ;;  %v3858_v52 = vpop.f32.mrb[108].mxu0  ;;  %v4039_v5 = vrot.slane %v4004_v53, %v4038_v60  ;;  %v4035_v11 = vrot.slane %v4004_v53, %v4034_v25  ;;  %v4015_v15 = vrot.slane %v4004_v53, %v4014_v62  ;;  %v5942_v60 = vld [vmem:[#allocation5 + $0x10] ss:$8 sps:$4 sm:$0xff]   ;;  %v5947_v25 = vld [vmem:[#allocation5 + $0x24] ss:$8 sps:$4 sm:$0xff]  }
 0x1df   :  { %v6504_v24 = vadd.f32 %v3936_v30, %v3776_v40  ;;  %v3482_v38 = vpop.f32.mrb[111].mxu1  ;;  %v3860_v43 = vpop.f32.mrb[109].mxu0  ;;  %v4027_v50 = vrot.slane %v4004_v53, %v4026_v58  ;;  %v4023_v27 = vrot.slane %v4004_v53, %v4022_v23  ;;  %v4011_v36 = vrot.slane %v4004_v53, %v4010_v7  ;;  %v5975_v58 = vld [vmem:[#allocation5 + $0xc0] ss:$8 sps:$4 sm:$0xff]   ;;  %v5980_v23 = vld [vmem:[#allocation5 + $0xd4] ss:$8 sps:$4 sm:$0xff]  }
 0x1e0   :  { %v3948_v54 = vadd.f32 %v3947_v22, %v3778_v42  ;;  %v3862_v57 = vpop.f32.mrb[110].mxu0  ;;  %v4018_v40 = vsub.s32 2, %v6506_v41 }
 0x1e1   :  { %v3863_v45 = vpop.f32.mrb[111].mxu0  ;;  %v5939_v57 = vld [vmem:[#allocation5] ss:$8 sps:$4 sm:$0xff]  }
 0x1e2   :  { %v4056_v39 = vadd.f32 %v4023_v27, %v3948_v54  ;;  %v4019_v47 = vrot.slane %v4004_v53, %v4018_v40  ;;  %v5941_v45 = vld [vmem:[#allocation5 + $0x4] ss:$8 sps:$4 sm:$0xff]   ;;  %v5981_v27 = vld [vmem:[#allocation5 + $0xe0] ss:$8 sps:$4 sm:$0xff]  }
 0x1e3   :  { %v6014_v40 = vld [vmem:[%s6663_s5 + $0x8] sm:$0xff]  }
 0x1e4   :  { %v3559_v63 = vpop.f32.mrb[112].mxu1  ;;  %v4055_v30 = vadd.f32 %v4019_v47, %v6504_v24  ;;  %v5944_v24 = vld [vmem:[#allocation5 + $0x14] ss:$8 sps:$4 sm:$0xff]   ;;  %v6021_v47 = vld [vmem:[%s6663_s5 + $0x68] sm:$0xff]  }
 0x1e5   :  { %v3980_v56 = vadd.f32 %v3979_v4, %v3559_v63  ;;  %v3561_v49 = vpop.f32.mrb[113].mxu1  ;;  %v5945_v63 = vld [vmem:[#allocation5 + $0x20] ss:$8 sps:$4 sm:$0xff]  }
 0x1e6   :  { %v3991_v2 = vadd.f32 %v3990_v55, %v3561_v49  ;;  %v3563_v3 = vpop.f32.mrb[114].mxu1  ;;  %v5953_v49 = vld [vmem:[#allocation5 + $0x44] ss:$8 sps:$4 sm:$0xff]  }
 0x1e7   :  { %v3981_v8 = vadd.f32 %v3980_v56, %v3858_v52  ;;  %v3564_v59 = vpop.f32.mrb[115].mxu1  ;;  %v5948_v56 = vld [vmem:[#allocation5 + $0x30] ss:$8 sps:$4 sm:$0xff]   ;;  %v5956_v3 = vld [vmem:[#allocation5 + $0x54] ss:$8 sps:$4 sm:$0xff]  }
 0x1e8   :  { %v3992_v12 = vadd.f32 %v3991_v2, %v3860_v43  ;;  %v5951_v2 = vld [vmem:[#allocation5 + $0x40] ss:$8 sps:$4 sm:$0xff]   ;;  %v5962_v59 = vld [vmem:[#allocation5 + $0x74] ss:$8 sps:$4 sm:$0xff]  }
 0x1e9   :  { %v4059_v33 = vadd.f32 %v4035_v11, %v3981_v8  ;;  %v5959_v8 = vld [vmem:[#allocation5 + $0x64] ss:$8 sps:$4 sm:$0xff]   ;;  %v5957_v11 = vld [vmem:[#allocation5 + $0x60] ss:$8 sps:$4 sm:$0xff]  }
 0x1ea   :  { %v4060_v13 = vadd.f32 %v4039_v5, %v3992_v12  ;;  %v5954_v5 = vld [vmem:[#allocation5 + $0x50] ss:$8 sps:$4 sm:$0xff]  }
 0x1eb   :  { %v5960_v12 = vld [vmem:[#allocation5 + $0x70] ss:$8 sps:$4 sm:$0xff]  }
 0x1ec   :  { %v3735_v14 = vpop.f32.mrb[116].mxu1  ;;  %4217 = vmatprep.subr.mxu1 %v4060_v13  ;;  %v5965_v13 = vld [vmem:[#allocation5 + $0x84] ss:$8 sps:$4 sm:$0xff]  }
 0x1ed   :  { %v3915_v17 = vadd.f32 %v3914_v16, %v3735_v14  ;;  %v3737_v19 = vpop.f32.mrb[117].mxu1  ;;  %4218 = vmatpush1.msra.mxu1 %v4059_v33  ;;  %v4030_v16 = vsub.s32 5, %v6506_v41  ;;  %v5963_v33 = vld [vmem:[#allocation5 + $0x80] ss:$8 sps:$4 sm:$0xff]   ;;  %v5968_v14 = vld [vmem:[#allocation5 + $0x94] ss:$8 sps:$4 sm:$0xff]  }
 0x1ee   :  { %v3926_v4 = vadd.f32 %v3925_v6, %v3737_v19  ;;  %v3739_v55 = vpop.f32.mrb[118].mxu1  ;;  %5584 = vmatprep.subr.mxu1 %v6117_v0  ;;  %v5969_v19 = vld [vmem:[#allocation5 + $0xa0] ss:$8 sps:$4 sm:$0xff]  }
 0x1ef   :  { %v3740_v21 = vpop.f32.mrb[119].mxu1  ;;  %v4031_v26 = vrot.slane %v4004_v53, %v4030_v16  ;;  %v4053_v34 = vadd.f32 %v4011_v36, %v3915_v17  ;;  %v5950_v53 = vld [vmem:[#allocation5 + $0x34] ss:$8 sps:$4 sm:$0xff]   ;;  %v5971_v17 = vld [vmem:[#allocation5 + $0xa4] ss:$8 sps:$4 sm:$0xff]  }
 0x1f0   :  { %v4054_v61 = vadd.f32 %v4015_v15, %v3926_v4  ;;  %v5966_v15 = vld [vmem:[#allocation5 + $0x90] ss:$8 sps:$4 sm:$0xff]   ;;  %v5974_v4 = vld [vmem:[#allocation5 + $0xb4] ss:$8 sps:$4 sm:$0xff]   ;;  %v5977_v21 = vld [vmem:[#allocation5 + $0xc4] ss:$8 sps:$4 sm:$0xff]  }
 0x1f1   :  { %v5972_v55 = vld [vmem:[#allocation5 + $0xb0] ss:$8 sps:$4 sm:$0xff]   ;;  %v5335_v16 = vld [vmem:[%s6660_s2 + $0x8] ss:$0 sm:$0xff] }
 0x1f2   :  { %4126 = vmatprep.mubr.f32.mxu0 %v4054_v61  ;;  %v5978_v61 = vld [vmem:[#allocation5 + $0xd0] ss:$8 sps:$4 sm:$0xff]   ;;  %v6028_v41 = vld [vmem:[%s6665_s7 + $0x8] sm:$0xff]  }
 0x1f3   :  { %v5984_v36 = vld [vmem:[#allocation5 + $0xf0] ss:$8 sps:$4 sm:$0xff]  }
 0x1f4   :  { %v3817_v9 = vpop.f32.mrb[120].mxu1 }
 0x1f5   :  { %v3959_v31 = vadd.f32 %v6498_v29, %v3817_v9  ;;  %v3819_v6 = vpop.f32.mrb[121].mxu1 }
 0x1f6   :  { %v3970_v18 = vadd.f32 %v6500_v35, %v3819_v6  ;;  %v3821_v10 = vpop.f32.mrb[122].mxu1 }
 0x1f7   :  { %v4057_v32 = vadd.f32 %v4027_v50, %v3959_v31  ;;  %v3822_v46 = vpop.f32.mrb[123].mxu1  ;;  %v5983_v50 = vld [vmem:[#allocation5 + $0xe4] ss:$8 sps:$4 sm:$0xff]   ;;  %v5986_v10 = vld [vmem:[#allocation5 + $0xf4] ss:$8 sps:$4 sm:$0xff]  }
 0x1f8   :  { %v4058_v42 = vadd.f32 %v4031_v26, %v3970_v18  ;;  %v6011_v46 = vld [vmem:[%s6663_s5 + $0x40] sm:$0xff]   ;;  %v6013_v26 = vld [vmem:[%s6663_s5 + $0x48] sm:$0xff]  }
 0x1f9   :  { %4062 = vmatprep.subr.mxu0 %v4057_v32  ;;  %v5989_v32 = vld [vmem:[#allocation5 + $0x104] ss:$8 sps:$4 sm:$0xff]  }
 0x1fa   :  { %4063 = vmatpush1.xpose.msra.mxu0 %v4056_v39  ;;  %v6012_v39 = vld [vmem:[%s6663_s5] sm:$0xff]  }
 0x1fb   :  { %5579 = vmatprep.subr.mxu0 %v6117_v0 }
 0x1fc   :  { %v3899_v29 = vpop.f32.mrb[124].mxu1 }
 0x1fd   :  { %v6528_v20 = vadd.f32 %v6502_v28, %v3899_v29  ;;  %4127 = vmatmul.mubr.f32.vlgmr.msra.gmra.mrb[112].mxu0 %v4053_v34  ;;  %v5577_v35 = vpop.f32.mrb[125].mxu1  ;;  %v6015_v34 = vld [vmem:[%s6663_s5 + $0x50] sm:$0xff]   ;;  %v6017_v29 = vld [vmem:[%s6663_s5 + $0x58] sm:$0xff]  }
 0x1fe   :  { %5580 = vmatpush3.xpose.msra.mxu0 %v4058_v42  ;;  %5581 = vmatprep.mubr.msk.f32.mxu0 %vm6119_vm0, %v6117_v0  ;;  %v3902_v44 = vpop.f32.mrb[126].mxu1  ;;  %v6016_v42 = vld [vmem:[%s6663_s5 + $0x10] sm:$0xff]   ;;  %v6019_v35 = vld [vmem:[%s6663_s5 + $0x60] sm:$0xff]  }
 0x1ff   :  { %v5578_v48 = vpop.f32.mrb[127].mxu1  ;;  %4664 = vmatprep.subr.bf16.mxu0 %v5941_v45  ;;  %v4061_v18 = vadd.f32 %v5335_v16, %v6528_v20  ;;  %v6018_v20 = vld [vmem:[%s6663_s5 + $0x18] sm:$0xff]   ;;  %v6020_v44 = vld [vmem:[%s6663_s5 + $0x20] sm:$0xff]   ;;  %v6032_v16 = vld [vmem:[%s6665_s7 + $0x28] sm:$0xff]  }
 0x200   :  { %v6022_v48 = vld [vmem:[%s6663_s5 + $0x28] sm:$0xff]  }
 0x201   :  { %v5993_v45 = vld [vmem:[#allocation5 + $0x120] ss:$8 sps:$4 sm:$0xff]  }
 0x205   :  { %5582 = vmatmul.mubr.f32.vlgmr.msra.gmra.mrb[112].mxu0 %v4055_v30 }
 0x206   :  { %4665 = vmatpush1.bf16.msra.mxu0 %v5939_v57  ;;  %v5995_v57 = vld [vmem:[#allocation5 + $0x124] ss:$8 sps:$4 sm:$0xff]  }
 0x207   :  { %4666 = vmatprep.subr.bf16.mxu0 %v5944_v24  ;;  %v5998_v24 = vld [vmem:[#allocation5 + $0x134] ss:$8 sps:$4 sm:$0xff]  }
 0x20a   :  { %4667 = vmatpush1.bf16.msra.mxu0 %v5942_v60  ;;  %v5996_v60 = vld [vmem:[#allocation5 + $0x130] ss:$8 sps:$4 sm:$0xff]  }
 0x20b   :  { %4668 = vmatprep.subr.bf16.mxu0 %v5947_v25  ;;  %v6001_v25 = vld [vmem:[#allocation5 + $0x144] ss:$8 sps:$4 sm:$0xff]  }
 0x20e   :  { %4669 = vmatpush1.bf16.msra.mxu0 %v5945_v63  ;;  %v5999_v63 = vld [vmem:[#allocation5 + $0x140] ss:$8 sps:$4 sm:$0xff]  }
 0x20f   :  { %4670 = vmatprep.subr.bf16.mxu0 %v5950_v53  ;;  %v6004_v53 = vld [vmem:[#allocation5 + $0x154] ss:$8 sps:$4 sm:$0xff]  }
 0x212   :  { %4671 = vmatpush1.bf16.msra.mxu0 %v5948_v56  ;;  %v6002_v56 = vld [vmem:[#allocation5 + $0x150] ss:$8 sps:$4 sm:$0xff]  }
 0x213   :  { %4672 = vmatprep.subr.bf16.mxu0 %v5953_v49  ;;  %v6007_v49 = vld [vmem:[#allocation5 + $0x164] ss:$8 sps:$4 sm:$0xff]  }
 0x216   :  { %4673 = vmatpush1.bf16.msra.mxu0 %v5951_v2  ;;  %v6010_v2 = vld [vmem:[#allocation5 + $0x174] ss:$8 sps:$4 sm:$0xff]  }
 0x217   :  { %4674 = vmatprep.subr.bf16.mxu0 %v5956_v3  ;;  %v6008_v3 = vld [vmem:[#allocation5 + $0x170] ss:$8 sps:$4 sm:$0xff]  }
 0x21a   :  { %4675 = vmatpush1.bf16.msra.mxu0 %v5954_v5 }
 0x21b   :  { %4676 = vmatprep.subr.bf16.mxu0 %v5959_v8  ;;  %v6023_v8 = vld [vmem:[%s6663_s5 + $0x70] sm:$0xff]  }
 0x21e   :  { %4677 = vmatpush1.bf16.msra.mxu0 %v5957_v11  ;;  %v6024_v11 = vld [vmem:[%s6663_s5 + $0x30] sm:$0xff]  }
 0x21f   :  { %4678 = vmatprep.subr.bf16.mxu0 %v5962_v59  ;;  %v6025_v59 = vld [vmem:[%s6663_s5 + $0x78] sm:$0xff]  }
 0x222   :  { %4679 = vmatpush1.bf16.msra.mxu0 %v5960_v12  ;;  %v6026_v12 = vld [vmem:[%s6663_s5 + $0x38] sm:$0xff]  }
 0x223   :  { %4680 = vmatprep.subr.bf16.mxu0 %v5965_v13  ;;  %v4412_v13 = vld [vmem:[%s6662_s4] sm:$0x3] }
 0x226   :  { %4681 = vmatpush1.bf16.msra.mxu0 %v5963_v33  ;;  %v4417_v33 = vrot.slane %v4412_v13, %v4010_v7  ;;  %v6030_v7 = vld [vmem:[%s6665_s7 + $0x18] sm:$0xff]  }
 0x227   :  { %4682 = vmatprep.subr.bf16.mxu0 %v5968_v14  ;;  %v4421_v14 = vrot.slane %v4412_v13, %v4014_v62  ;;  %v6029_v62 = vld [vmem:[%s6665_s7 + $0x10] sm:$0xff]  }
 0x22a   :  { %4683 = vmatpush1.bf16.msra.mxu0 %v5966_v15 }
 0x22b   :  { %4684 = vmatprep.subr.bf16.mxu0 %v5971_v17 }
 0x22e   :  { %4685 = vmatpush1.bf16.msra.mxu0 %v5969_v19 }
 0x22f   :  { %4686 = vmatprep.subr.bf16.mxu0 %v5974_v4 }
 0x232   :  { %4687 = vmatpush1.bf16.msra.mxu0 %v5972_v55 }
 0x233   :  { %4688 = vmatprep.subr.bf16.mxu0 %v5977_v21 }
 0x236   :  { %4689 = vmatpush1.bf16.msra.mxu0 %v5975_v58 }
 0x237   :  { %4690 = vmatprep.subr.bf16.mxu0 %v5980_v23 }
 0x23a   :  { %4691 = vmatpush1.bf16.msra.mxu0 %v5978_v61 }
 0x23b   :  { %4692 = vmatprep.subr.bf16.mxu0 %v5983_v50  ;;  %v6027_v50 = vld [vmem:[%s6665_s7] sm:$0xff]  }
 0x23e   :  { %4693 = vmatpush1.bf16.msra.mxu0 %v5981_v27 }
 0x23f   :  { %4694 = vmatprep.subr.bf16.mxu0 %v5986_v10  ;;  %v5386_v10 = vld [vmem:[%s6664_s6] ss:$0 sm:$0xff] }
 0x242   :  { %4695 = vmatpush1.bf16.msra.mxu0 %v5984_v36 }
 0x243   :  { %4705 = vmatprep.subr.bf16.mxu0 %v5989_v32 }
 0x2d8   :  { %v4198_v51 = vpop.f32.mrb[112].mxu0 }
 0x2d9   :  { %v5583_v22 = vpop.f32.mrb[113].mxu0  ;;  %v4203_v37 = vsel %vm4202_vm2, %v4198_v51, -inf }
 0x2da   :  { %4204 = vmax.xlane.f32.xlu0 %v4203_v37  ;;  %v5987_v37 = vld [vmem:[#allocation5 + $0x100] ss:$8 sps:$4 sm:$0xff]  }
 0x367   :  { %v4205_v28 = vpop.xlane.xlu0 %4204 }
 0x368   :  { %v4206_v52 = vsub.f32 %v4198_v51, %v4205_v28 }
 0x36a   :  { %v4207_v38 = vmul.f32 1.442695, %v4206_v52  ;;  %v5992_v52 = vld [vmem:[#allocation5 + $0x114] ss:$8 sps:$4 sm:$0xff]  }
 0x36c   :  { %6035 = vpow2.f32 %v4207_v38 }
 0x376   :  { %v6534_v43 = vpop.eup %6035 }
 0x377   :  { %v4209_v54 = vsel %vm4202_vm2, %v6534_v43, 0.0 }
 0x378   :  { %4210 = vadd.xlane.f32.xlu0 %v4209_v54  ;;  %v5990_v54 = vld [vmem:[#allocation5 + $0x110] ss:$8 sps:$4 sm:$0xff]  }
 0x405   :  { %v4211_v9 = vpop.xlane.xlu0 %4210 }
 0x406   :  { %6037 = vrcp.f32 %v4211_v9  ;;  %v6031_v9 = vld [vmem:[%s6665_s7 + $0x20] sm:$0xff]  }
 0x410   :  { %v6038_v31 = vpop.eup %6037 }
 0x411   :  { %v4213_v6 = vmul.f32 %v6038_v31, %v6534_v43  ;;  %v6033_v31 = vld [vmem:[%s6665_s7 + $0x30] sm:$0xff]  }
 0x413   :  { %5336 = vmatmul.mubr.msk.f32.vlgmr.msra.gmra.mrb[128].mxu1 %vm4202_vm2, %v4213_v6 }
 0x414   :  { %5585 = vmatpush3.msra.mxu1 %v4061_v18  ;;  %5586 = vmatprep.mubr.msk.f32.mxu1 %vm6119_vm0, %v6117_v0 }
 0x415   :  { %5452 = vmatprep.subr.bf16.mxu1 %v6011_v46 }
 0x417   :  { %5587 = vmatmul.mubr.msk.f32.vlgmr.msra.gmra.mrb[130].mxu1 %vm4202_vm2, %v4213_v6  ;;  %v6034_v6 = vld [vmem:[%s6665_s7 + $0x38] sm:$0xff]  }
 0x418   :  { %5453 = vmatpush3.bf16.msra.mxu1 %v6012_v39 }
 0x419   :  { %5454 = vmatprep.subr.bf16.mxu1 %v6013_v26 }
 0x41c   :  { %5455 = vmatpush3.bf16.msra.mxu1 %v6014_v40 }
 0x41d   :  { %5456 = vmatprep.subr.bf16.mxu1 %v6015_v34 }
 0x420   :  { %5457 = vmatpush3.bf16.msra.mxu1 %v6016_v42 }
 0x421   :  { %5458 = vmatprep.subr.bf16.mxu1 %v6017_v29 }
 0x424   :  { %5459 = vmatpush3.bf16.msra.mxu1 %v6018_v20 }
 0x425   :  { %5460 = vmatprep.subr.bf16.mxu1 %v6019_v35 }
 0x428   :  { %5461 = vmatpush3.bf16.msra.mxu1 %v6020_v44 }
 0x429   :  { %5462 = vmatprep.subr.bf16.mxu1 %v6021_v47 }
 0x42c   :  { %5463 = vmatpush3.bf16.msra.mxu1 %v6022_v48 }
 0x42d   :  { %5464 = vmatprep.subr.bf16.mxu1 %v6023_v8 }
 0x430   :  { %5465 = vmatpush3.bf16.msra.mxu1 %v6024_v11 }
 0x431   :  { %5466 = vmatprep.subr.bf16.mxu1 %v6025_v59 }
 0x434   :  { %5467 = vmatpush3.bf16.msra.mxu1 %v6026_v12 }
 0x435   :  { %5589 = vmatprep.subr.bf16.mxu1 %v6117_v0 }
 0x4e6   :  { %v4283_v30 = vpop.f32.mrb[128].mxu1 }
 0x4e7   :  { %4358 = vst [vmem:[#allocation7] sm:$0xff] %v4283_v30  ;;  %v4285_v51 = vpop.f32.mrb[129].mxu1  ;;  %v4361_v28 = vpack.c.bf16 %v4283_v30, %v4283_v30 }
 0x4e8   :  { %4359 = vst [vmem:[#allocation7 + $0x8] sm:$0xff] %v4285_v51  ;;  %v4362_v22 = vpack.c.bf16 %v4285_v51, %v4285_v51 }
 0x4ea   :  { %v4354_v38 = vpop.f32.mrb[130].mxu1  ;;  %4696 = vmatprep.mubr.bf16.mxu0 %v4362_v22 }
 0x4eb   :  { %4360 = vst [vmem:[#allocation7 + $0x10] sm:$0xff] %v4354_v38  ;;  %v5588_v43 = vpop.f32.mrb[131].mxu1  ;;  %4697 = vmatmul.mubr.bf16.vlgmr.msra.gmra.mrb[116].mxu0 %v4361_v28  ;;  %v4363_v5 = vpack.c.bf16 %v4354_v38, %v4354_v38 }
 0x4ec   :  { %4706 = vmatpush1.bf16.msra.mxu0 %v5987_v37  ;;  %4737 = vmatprep.mubr.bf16.mxu0 %v6118_v1  ;;  %v6005_v1 = vld [vmem:[#allocation5 + $0x160] ss:$8 sps:$4 sm:$0xff]  }
 0x4ed   :  { %4707 = vmatprep.subr.bf16.mxu0 %v5992_v52 }
 0x4f0   :  { %4708 = vmatpush1.bf16.msra.mxu0 %v5990_v54 }
 0x4f1   :  { %4709 = vmatprep.subr.bf16.mxu0 %v5995_v57 }
 0x4f4   :  { %4710 = vmatpush1.bf16.msra.mxu0 %v5993_v45 }
 0x4f5   :  { %4711 = vmatprep.subr.bf16.mxu0 %v5998_v24 }
 0x4f8   :  { %4712 = vmatpush1.bf16.msra.mxu0 %v5996_v60 }
 0x4f9   :  { %4713 = vmatprep.subr.bf16.mxu0 %v6001_v25 }
 0x4fc   :  { %4714 = vmatpush1.bf16.msra.mxu0 %v5999_v63 }
 0x4fd   :  { %4715 = vmatprep.subr.bf16.mxu0 %v6004_v53 }
 0x500   :  { %4716 = vmatpush1.bf16.msra.mxu0 %v6002_v56 }
 0x501   :  { %4717 = vmatprep.subr.bf16.mxu0 %v6007_v49 }
 0x504   :  { %4718 = vmatpush1.bf16.msra.mxu0 %v6005_v1 }
 0x505   :  { %4719 = vmatprep.subr.bf16.mxu0 %v6010_v2 }
 0x508   :  { %4720 = vmatpush1.bf16.msra.mxu0 %v6008_v3 }
 0x50b   :  { %4738 = vmatmul.mubr.bf16.vlgmr.msra.gmra.mrb[116].mxu0 %v4363_v5 }
 0x5de   :  { %v4739_v15 = vpop.f32.mrb[116].mxu0 }
 0x5df   :  { %v5609_v17 = vadd.f32 %v4739_v15, %v4417_v33  ;;  %v4741_v19 = vpop.f32.mrb[117].mxu0 }
 0x5e0   :  { %v5610_v4 = vadd.f32 %v4741_v19, %v4421_v14  ;;  %v4743_v55 = vpop.f32.mrb[118].mxu0 }
 0x5e1   :  { %v4746_v21 = vmax.f32 %v5609_v17, 0.0  ;;  %v4744_v58 = vpop.f32.mrb[119].mxu0 }
 0x5e2   :  { %v4747_v23 = vmax.f32 %v5610_v4, 0.0 }
 0x5e3   :  { %v4748_v27 = vpack.c.bf16 %v4746_v21, %v4746_v21 }
 0x5e4   :  { %v4749_v61 = vpack.c.bf16 %v4747_v23, %v4747_v23 }
 0x5e6   :  { %4917 = vmatprep.mubr.bf16.mxu1 %v4749_v61 }
 0x5e7   :  { %4918 = vmatmul.mubr.bf16.vlgmr.msra.gmra.mrb[132].mxu1 %v4748_v27 }
 0x5e8   :  { %5590 = vmatpush3.bf16.msra.mxu1 %v6027_v50  ;;  %5605 = vmatprep.mubr.msk.bf16.mxu1 %vm6119_vm0, %v6117_v0 }
 0x5e9   :  { %5591 = vmatprep.subr.bf16.mxu1 %v6117_v0 }
 0x5ec   :  { %5592 = vmatpush3.bf16.msra.mxu1 %v6028_v41 }
 0x5ed   :  { %5593 = vmatprep.subr.bf16.mxu1 %v6117_v0 }
 0x5f0   :  { %5594 = vmatpush3.bf16.msra.mxu1 %v6029_v62 }
 0x5f1   :  { %5595 = vmatprep.subr.bf16.mxu1 %v6117_v0 }
 0x5f4   :  { %5596 = vmatpush3.bf16.msra.mxu1 %v6030_v7 }
 0x5f5   :  { %5597 = vmatprep.subr.bf16.mxu1 %v6117_v0 }
 0x5f8   :  { %5598 = vmatpush3.bf16.msra.mxu1 %v6031_v9 }
 0x5f9   :  { %5599 = vmatprep.subr.bf16.mxu1 %v6117_v0 }
 0x5fc   :  { %5600 = vmatpush3.bf16.msra.mxu1 %v6032_v16 }
 0x5fd   :  { %5601 = vmatprep.subr.bf16.mxu1 %v6117_v0 }
 0x600   :  { %5602 = vmatpush3.bf16.msra.mxu1 %v6033_v31 }
 0x601   :  { %5603 = vmatprep.subr.bf16.mxu1 %v6117_v0 }
 0x604   :  { %5604 = vmatpush3.bf16.msra.mxu1 %v6034_v6 }
 0x6ba   :  { %v5468_v18 = vpop.f32.mrb[132].mxu1 }
 0x6bb   :  { %v5469_v36 = vpop.f32.mrb[133].mxu1 }
 0x6bc   :  { %v5470_v32 = vadd.f32 %v5469_v36, %v5468_v18  ;;  %v5471_v46 = vpop.f32.mrb[134].mxu1 }
 0x6bd   :  { %v5472_v39 = vpop.f32.mrb[135].mxu1 }
 0x6be   :  { %v4920_v26 = vadd.f32 %v5470_v32, %v5386_v10 }
 0x6c0   :  { %v4925_v40 = vmax.f32 %v4920_v26, 0.0 }
 0x6c2   :  { %v4926_v34 = vpack.c.bf16 %v4925_v40, %v4925_v40 }
 0x6c4   :  { %5606 = vmatmul.mubr.bf16.vlgmr.msra.gmra.mrb[136].mxu1 %v4926_v34 }
 0x6c5   :  { %6094 = shalt.err (!%p6091_p6)
}
 0x6c6   :  { %s6095_s28 = scalar_lea.hbm %s6668_s10, 384 }
 0x6c7   :  { %p6096_p7 = scmp.ne.s32.totalorder %s6668_s10, %s6095_s28  ;;  %p6099_p8 = scmp.lt.u32.totalorder %s6095_s28, %s6668_s10 }
 0x6c9   :  { %p6101_p9 = pnand %p6099_p8, %p6096_p7 }
 0x6cb   :  { %6104 = shalt.err (!%p6101_p9)
}
 0x6cc   :  { %5050 = dma.vmem_to_hbm [thread:$0]  %s5048_s26, 384, %s6668_s10, [#allocation4]   ;;  %v5403_v0 = vld [vmem:[%s6666_s8] ss:$0 sm:$0xff] }
 0x797   :  { %v5032_v42 = vpop.f32.mrb[136].mxu1 }
 0x798   :  { %v5033_v29 = vadd.f32 %v5403_v0, %v5032_v42  ;;  %v5607_v20 = vpop.f32.mrb[137].mxu1 }
 0x799   :  { %v5035_v35 = vpop.f32.mrb[138].mxu1 }
 0x79a   :  { %5038 = vst [vmem:[%s6667_s9] sm:$0xff] %v5033_v29  ;;  %v5608_v44 = vpop.f32.mrb[139].mxu1 }
 0x79b   :  { %6109 = dma.done.wait [#allocation4], 384  }
 0x79c   :  { %6110 = vsyncadd [#allocation4], 4294966912 }
 0x79d   :  { %5056 = vsyncpa [#allocation3], 1 }
 0x79e   :  { %5057 = vsyncpa [#allocation6], 1 }
 0x79f   :  { %5058 = vsyncpa [#allocation4], 1 }

</bundles_post_ra>
